<compile_context>
chip_gen: v6e
topology: v6e:2x2x1
jax: 0.10.0
libtpu: 0.0.40
codegen_flags: <defaults>
</compile_context>

<pallas_src>
import functools

import jax
import jax.numpy as jnp
from jax import lax
from jax.experimental import pallas as pl
from jax.experimental.pallas import tpu as pltpu


def _vmem_limit_bytes():
    """Generation-aware scoped-VMEM limit: ~96 MiB on v5e/v6e (128 MiB
    physical), ~48 MiB on v7x (64 MiB physical)."""
    try:
        cap = pltpu.get_tpu_info().vmem_capacity_bytes
    except Exception:  # API drift / non-TPU tracing: conservative fallback.
        cap = 64 * 1024 * 1024
    return int(min(100 * 1024 * 1024, (cap * 3) // 4))


def _pick_tq(n, num_heads, attn_itemsize):
    """Query-tile size.  Full N when small; otherwise a multiple of 128 chosen
    so the per-step attn output block (H, tq, N) stays ~<= 8 MiB (keeps double
    buffering comfortable inside v7x's 64 MiB VMEM)."""
    if n <= 128:
        return n
    budget = 8 * 1024 * 1024
    tq = budget // max(1, num_heads * n * attn_itemsize)
    tq = max(128, (tq // 128) * 128)
    return n if tq >= n else tq


# ---------------------------------------------------------------------------
# Fused kernel: QKV projection + multi-head softmax attention + out projection
# ---------------------------------------------------------------------------
def _fused_attn_kernel(
    x_q_ref,      # (1, tq, C)   query rows of x for this tile
    x_kv_ref,     # (1, N, C)    full sequence (used only at qi == 0)
    qkv_w_ref,    # (C, 3C)      resident
    qkv_b_ref,    # (1, 3C)      resident
    proj_w_ref,   # (C, C)       resident
    proj_b_ref,   # (1, C)       resident
    out_ref,      # (1, tq, C)
    attn_ref,     # (1, H, tq, N)
    k_sc,         # VMEM (N, C)  persistent across query tiles of one batch
    v_sc,         # VMEM (N, C)
    ctx_sc,       # VMEM (tq, C) f32 head-major context accumulator
    *,
    num_heads,
    head_dim,
    scale,
):
    H, D = num_heads, head_dim
    C = H * D
    cdt = x_q_ref.dtype  # MXU operand dtype (bf16 inputs -> full MXU rate)

    # --- K / V projection for the whole sequence, once per batch step -------
    @pl.when(pl.program_id(1) == 0)
    def _project_kv():
        x_full = x_kv_ref[0]                                        # (N, C)
        k = jnp.dot(x_full, qkv_w_ref[:, C:2 * C],
                    preferred_element_type=jnp.float32)
        k = k + qkv_b_ref[:, C:2 * C].astype(jnp.float32)
        v = jnp.dot(x_full, qkv_w_ref[:, 2 * C:3 * C],
                    preferred_element_type=jnp.float32)
        v = v + qkv_b_ref[:, 2 * C:3 * C].astype(jnp.float32)
        k_sc[...] = k.astype(k_sc.dtype)
        v_sc[...] = v.astype(v_sc.dtype)

    # --- Q projection for this query tile (scale folded in: tq x C mul) -----
    x_q = x_q_ref[0]                                                # (tq, C)
    q = jnp.dot(x_q, qkv_w_ref[:, 0:C], preferred_element_type=jnp.float32)
    q = (q + qkv_b_ref[:, 0:C].astype(jnp.float32)) * scale
    q = q.astype(cdt)

    k = k_sc[...]
    v = v_sc[...]

    # --- per-head attention --------------------------------------------------
    for h in range(H):
        lo, hi = h * D, (h + 1) * D
        # q @ k^T via contraction on the last dims (no XLU transpose).
        s = lax.dot_general(
            q[:, lo:hi], k[:, lo:hi], (((1,), (1,)), ((), ())),
            preferred_element_type=jnp.float32,
        )                                                           # (tq, N)
        m = jnp.max(s, axis=-1, keepdims=True)
        e = jnp.exp(s - m)
        # Exact reciprocal: attn is a user-visible output (rows sum to 1).
        p = e * (1.0 / jnp.sum(e, axis=-1, keepdims=True))
        attn_ref[0, h] = p.astype(attn_ref.dtype)
        # Write this head's (tq, D) result at its static column offset
        # (head-major == torch's (attn@v).transpose(1,2).reshape(B,N,C)).
        ctx_sc[:, lo:hi] = jnp.dot(
            p.astype(cdt), v[:, lo:hi], preferred_element_type=jnp.float32
        )

    # --- fused output projection, single lane-dense (tq, C) store -----------
    o = jnp.dot(ctx_sc[...].astype(cdt), proj_w_ref[...],
                preferred_element_type=jnp.float32)
    out_ref[0] = (o + proj_b_ref[...].astype(jnp.float32)).astype(out_ref.dtype)


# ---------------------------------------------------------------------------
# Full Attention forward (Attention.forward, matrix_return=False)
# ---------------------------------------------------------------------------
def attention_forward(x, params, num_heads):
    B, N, C = x.shape
    H = num_heads
    D = C // H
    scale = D ** (-0.5)

    qkv_w, qkv_b = params["qkv_w"], params["qkv_b"]
    proj_w, proj_b = params["proj_w"], params["proj_b"]

    attn_dtype = x.dtype  # NOTE: on the bf16 fast path, attn is returned bf16.
    tq = _pick_tq(N, H, jnp.dtype(attn_dtype).itemsize)
    nq = pl.cdiv(N, tq)

    kernel = functools.partial(
        _fused_attn_kernel, num_heads=H, head_dim=D, scale=scale
    )

    out, attn = pl.pallas_call(
        kernel,
        out_shape=(
            jax.ShapeDtypeStruct((B, N, C), x.dtype),
            jax.ShapeDtypeStruct((B, H, N, N), attn_dtype),
        ),
        grid_spec=pltpu.PrefetchScalarGridSpec(
            num_scalar_prefetch=0,
            grid=(B, nq),
            in_specs=[
                pl.BlockSpec((1, tq, C), lambda b, qi: (b, qi, 0)),   # x (q rows)
                pl.BlockSpec((1, N, C), lambda b, qi: (b, 0, 0)),     # x (full, k/v)
                pl.BlockSpec((C, 3 * C), lambda b, qi: (0, 0)),       # qkv_w resident
                pl.BlockSpec((1, 3 * C), lambda b, qi: (0, 0)),       # qkv_b resident
                pl.BlockSpec((C, C), lambda b, qi: (0, 0)),           # proj_w resident
                pl.BlockSpec((1, C), lambda b, qi: (0, 0)),           # proj_b resident
            ],
            out_specs=(
                pl.BlockSpec((1, tq, C), lambda b, qi: (b, qi, 0)),
                pl.BlockSpec((1, H, tq, N), lambda b, qi: (b, 0, qi, 0)),
            ),
            scratch_shapes=[
                pltpu.VMEM((N, C), x.dtype),        # K (all heads) per batch
                pltpu.VMEM((N, C), x.dtype),        # V (all heads) per batch
                pltpu.VMEM((tq, C), jnp.float32),   # head-major context accum
            ],
        ),
        compiler_params=pltpu.CompilerParams(
            dimension_semantics=("parallel", "arbitrary"),
            vmem_limit_bytes=_vmem_limit_bytes(),
        ),
    )(x, x, qkv_w, qkv_b.reshape(1, 3 * C), proj_w, proj_b.reshape(1, C))

    return out, attn


# ---------------------------------------------------------------------------
# Plain-JAX reference for correctness check
# ---------------------------------------------------------------------------
def attention_reference(x, params, num_heads):
    B, N, C = x.shape
    H = num_heads
    D = C // H
    scale = D ** (-0.5)
    qkv = (x.reshape(B * N, C) @ params["qkv_w"] + params["qkv_b"]).reshape(
        B, N, 3, H, D
    ).transpose(2, 0, 3, 1, 4)
    q, k, v = qkv[0], qkv[1], qkv[2]
    s = jnp.einsum("bhnd,bhmd->bhnm", q, k) * scale
    attn = jax.nn.softmax(s, axis=-1)
    ctx = jnp.einsum("bhnm,bhmd->bhnd", attn, v)
    ctx = ctx.transpose(0, 2, 1, 3).reshape(B * N, C)
    out = (ctx @ params["proj_w"] + params["proj_b"]).reshape(B, N, C)
    return out, attn


if __name__ == "__main__":
    # Small shapes consistent with the module: dim=32, num_heads=8 (head_dim=4).
    B, N, C = 2, 8, 32
    num_heads = 8

    key = jax.random.PRNGKey(0)
    kx, kqkv, kpw, kpb = jax.random.split(key, 4)

    x = jax.random.normal(kx, (B, N, C), dtype=jnp.float32)

    # Deterministic synthetic parameters (JAX convention: weight is (in, out)).
    params = {
        "qkv_w": 0.02 * jax.random.normal(kqkv, (C, 3 * C), dtype=jnp.float32),
        "qkv_b": jnp.zeros((3 * C,), dtype=jnp.float32),  # qkv_bias=False
        "proj_w": 0.02 * jax.random.normal(kpw, (C, C), dtype=jnp.float32),
        "proj_b": 0.01 * jax.random.normal(kpb, (C,), dtype=jnp.float32),
    }

    out, attn = attention_forward(x, params, num_heads)
    jax.block_until_ready(out)
    jax.block_until_ready(attn)

    ref_out, ref_attn = attention_reference(x, params, num_heads)
    assert jnp.allclose(out, ref_out, atol=2e-3, rtol=2e-3), "output mismatch"
    assert jnp.allclose(attn, ref_attn, atol=2e-3, rtol=2e-3), "attn mismatch"

    print("KERNEL_OK")
</pallas_src>

<mosaic_0001>
module attributes {stable_mosaic.version = 11 : i64} {
  func.func @_fused_attn_kernel(%arg0: i32, %arg1: i32, %arg2: memref<1x8x32xf32, #tpu.memory_space<vmem>>, %arg3: memref<1x8x32xf32, #tpu.memory_space<vmem>>, %arg4: memref<32x96xf32, #tpu.memory_space<vmem>>, %arg5: memref<1x96xf32, #tpu.memory_space<vmem>>, %arg6: memref<32x32xf32, #tpu.memory_space<vmem>>, %arg7: memref<1x32xf32, #tpu.memory_space<vmem>>, %arg8: memref<1x8x32xf32, #tpu.memory_space<vmem>>, %arg9: memref<1x8x8x8xf32, #tpu.memory_space<vmem>>, %arg10: memref<8x32xf32, #tpu.memory_space<vmem>>, %arg11: memref<8x32xf32, #tpu.memory_space<vmem>>, %arg12: memref<8x32xf32, #tpu.memory_space<vmem>>) attributes {dimension_semantics = [#tpu.dimension_semantics<parallel>, #tpu.dimension_semantics<arbitrary>], iteration_bounds = array<i64: 2, 1>, scalar_prefetch = 0 : i64, scratch_operands = 3 : i64, tpu.core_type = #tpu.core_type<tc>, window_params = [{transform_indices = @transform_0, window_bounds = array<i64: 1, 8, 32>}, {transform_indices = @transform_1, window_bounds = array<i64: 1, 8, 32>}, {pipeline_mode = #tpu.pipeline_mode<synchronous>, transform_indices = @transform_2, window_bounds = array<i64: 32, 96>}, {pipeline_mode = #tpu.pipeline_mode<synchronous>, transform_indices = @transform_3, window_bounds = array<i64: 1, 96>}, {pipeline_mode = #tpu.pipeline_mode<synchronous>, transform_indices = @transform_4, window_bounds = array<i64: 32, 32>}, {pipeline_mode = #tpu.pipeline_mode<synchronous>, transform_indices = @transform_5, window_bounds = array<i64: 1, 32>}, {transform_indices = @transform_6, window_bounds = array<i64: 1, 8, 32>}, {transform_indices = @transform_7, window_bounds = array<i64: 1, 8, 8, 8>}]} {
    %c0_i32 = arith.constant 0 : i32
    %0 = arith.cmpi eq, %arg1, %c0_i32 : i32
    %1 = arith.extui %0 : i1 to i32
    %c0_i32_0 = arith.constant 0 : i32
    %2 = arith.cmpi ne, %1, %c0_i32_0 : i32
    scf.if %2 {
      %c0_97 = arith.constant 0 : index
      %c0_98 = arith.constant 0 : index
      %c0_99 = arith.constant 0 : index
      %183 = vector.load %arg3[%c0_97, %c0_98, %c0_99] : memref<1x8x32xf32, #tpu.memory_space<vmem>>, vector<1x8x32xf32>
      %184 = vector.shape_cast %183 : vector<1x8x32xf32> to vector<8x32xf32>
      %c0_100 = arith.constant 0 : index
      %c32 = arith.constant 32 : index
      %185 = vector.load %arg4[%c0_100, %c32] : memref<32x96xf32, #tpu.memory_space<vmem>>, vector<32x32xf32>
      %cst_101 = arith.constant dense<0.000000e+00> : vector<8x32xf32>
      %186 = tpu.matmul %184, %185, %cst_101 {dimension_numbers = #tpu.dot_dimension_numbers<[1], [0], [0], [1], [0, 0, 1, 1], [], []>} : vector<8x32xf32>, vector<32x32xf32>, vector<8x32xf32> -> vector<8x32xf32>
      %c0_102 = arith.constant 0 : index
      %c32_103 = arith.constant 32 : index
      %187 = vector.load %arg5[%c0_102, %c32_103] : memref<1x96xf32, #tpu.memory_space<vmem>>, vector<1x32xf32>
      %188 = vector.broadcast %187 : vector<1x32xf32> to vector<8x32xf32>
      %189 = arith.addf %186, %188 : vector<8x32xf32>
      %c0_104 = arith.constant 0 : index
      %c64 = arith.constant 64 : index
      %190 = vector.load %arg4[%c0_104, %c64] : memref<32x96xf32, #tpu.memory_space<vmem>>, vector<32x32xf32>
      %cst_105 = arith.constant dense<0.000000e+00> : vector<8x32xf32>
      %191 = tpu.matmul %184, %190, %cst_105 {dimension_numbers = #tpu.dot_dimension_numbers<[1], [0], [0], [1], [0, 0, 1, 1], [], []>} : vector<8x32xf32>, vector<32x32xf32>, vector<8x32xf32> -> vector<8x32xf32>
      %c0_106 = arith.constant 0 : index
      %c64_107 = arith.constant 64 : index
      %192 = vector.load %arg5[%c0_106, %c64_107] : memref<1x96xf32, #tpu.memory_space<vmem>>, vector<1x32xf32>
      %193 = vector.broadcast %192 : vector<1x32xf32> to vector<8x32xf32>
      %194 = arith.addf %191, %193 : vector<8x32xf32>
      %c0_108 = arith.constant 0 : index
      %c0_109 = arith.constant 0 : index
      %195 = vector.load %arg10[%c0_108, %c0_109] : memref<8x32xf32, #tpu.memory_space<vmem>>, vector<8x32xf32>
      tpu.vector_store %arg10[%c0_108, %c0_109], %189 {strides = array<i32>} : memref<8x32xf32, #tpu.memory_space<vmem>>, vector<8x32xf32>,
      %c0_110 = arith.constant 0 : index
      %c0_111 = arith.constant 0 : index
      %196 = vector.load %arg11[%c0_110, %c0_111] : memref<8x32xf32, #tpu.memory_space<vmem>>, vector<8x32xf32>
      tpu.vector_store %arg11[%c0_110, %c0_111], %194 {strides = array<i32>} : memref<8x32xf32, #tpu.memory_space<vmem>>, vector<8x32xf32>,
    } else {
    }
    %c0 = arith.constant 0 : index
    %c0_1 = arith.constant 0 : index
    %c0_2 = arith.constant 0 : index
    %3 = vector.load %arg2[%c0, %c0_1, %c0_2] : memref<1x8x32xf32, #tpu.memory_space<vmem>>, vector<1x8x32xf32>
    %4 = vector.shape_cast %3 : vector<1x8x32xf32> to vector<8x32xf32>
    %c0_3 = arith.constant 0 : index
    %c0_4 = arith.constant 0 : index
    %5 = vector.load %arg4[%c0_3, %c0_4] : memref<32x96xf32, #tpu.memory_space<vmem>>, vector<32x32xf32>
    %cst = arith.constant dense<0.000000e+00> : vector<8x32xf32>
    %6 = tpu.matmul %4, %5, %cst {dimension_numbers = #tpu.dot_dimension_numbers<[1], [0], [0], [1], [0, 0, 1, 1], [], []>} : vector<8x32xf32>, vector<32x32xf32>, vector<8x32xf32> -> vector<8x32xf32>
    %c0_5 = arith.constant 0 : index
    %c0_6 = arith.constant 0 : index
    %7 = vector.load %arg5[%c0_5, %c0_6] : memref<1x96xf32, #tpu.memory_space<vmem>>, vector<1x32xf32>
    %8 = vector.broadcast %7 : vector<1x32xf32> to vector<8x32xf32>
    %9 = arith.addf %6, %8 : vector<8x32xf32>
    %cst_7 = arith.constant 5.000000e-01 : f32
    %10 = vector.broadcast %cst_7 : f32 to vector<8x32xf32>
    %11 = arith.mulf %9, %10 : vector<8x32xf32>
    %c0_8 = arith.constant 0 : index
    %c0_9 = arith.constant 0 : index
    %12 = vector.load %arg10[%c0_8, %c0_9] : memref<8x32xf32, #tpu.memory_space<vmem>>, vector<8x32xf32>
    %c0_10 = arith.constant 0 : index
    %c0_11 = arith.constant 0 : index
    %13 = vector.load %arg11[%c0_10, %c0_11] : memref<8x32xf32, #tpu.memory_space<vmem>>, vector<8x32xf32>
    %14 = vector.extract_strided_slice %11 {offsets = [0, 0], sizes = [8, 4], strides = [1, 1]} : vector<8x32xf32> to vector<8x4xf32>
    %15 = vector.extract_strided_slice %12 {offsets = [0, 0], sizes = [8, 4], strides = [1, 1]} : vector<8x32xf32> to vector<8x4xf32>
    %cst_12 = arith.constant dense<0.000000e+00> : vector<8x8xf32>
    %16 = tpu.matmul %14, %15, %cst_12 {dimension_numbers = #tpu.dot_dimension_numbers<[1], [1], [0], [0], [0, 0, 1, 0], [], []>} : vector<8x4xf32>, vector<8x4xf32>, vector<8x8xf32> -> vector<8x8xf32>
    %cst_13 = arith.constant dense<0xFF800000> : vector<8xf32>
    %17 = vector.multi_reduction <maximumf>, %16, %cst_13 [1] : vector<8x8xf32> to vector<8xf32>
    %18 = vector.shape_cast %17 : vector<8xf32> to vector<8x1xf32>
    %19 = vector.broadcast %18 : vector<8x1xf32> to vector<8x8xf32>
    %20 = arith.subf %16, %19 : vector<8x8xf32>
    %21 = math.exp %20 : vector<8x8xf32>
    %cst_14 = arith.constant dense<0.000000e+00> : vector<8xf32>
    %22 = vector.multi_reduction <add>, %21, %cst_14 [1] : vector<8x8xf32> to vector<8xf32>
    %23 = vector.shape_cast %22 : vector<8xf32> to vector<8x1xf32>
    %cst_15 = arith.constant 1.000000e+00 : f32
    %24 = vector.broadcast %cst_15 : f32 to vector<8x1xf32>
    %25 = arith.divf %24, %23 : vector<8x1xf32>
    %26 = vector.broadcast %25 : vector<8x1xf32> to vector<8x8xf32>
    %27 = arith.mulf %21, %26 : vector<8x8xf32>
    %c0_16 = arith.constant 0 : index
    %c0_17 = arith.constant 0 : index
    %c0_18 = arith.constant 0 : index
    %c0_19 = arith.constant 0 : index
    %28 = vector.load %arg9[%c0_16, %c0_17, %c0_18, %c0_19] : memref<1x8x8x8xf32, #tpu.memory_space<vmem>>, vector<1x1x8x8xf32>
    %29 = vector.shape_cast %28 : vector<1x1x8x8xf32> to vector<8x8xf32>
    %30 = vector.shape_cast %27 : vector<8x8xf32> to vector<1x1x8x8xf32>
    tpu.vector_store %arg9[%c0_16, %c0_17, %c0_18, %c0_19], %30 {strides = array<i32>} : memref<1x8x8x8xf32, #tpu.memory_space<vmem>>, vector<1x1x8x8xf32>,
    %31 = vector.extract_strided_slice %13 {offsets = [0, 0], sizes = [8, 4], strides = [1, 1]} : vector<8x32xf32> to vector<8x4xf32>
    %cst_20 = arith.constant dense<0.000000e+00> : vector<8x4xf32>
    %32 = tpu.matmul %27, %31, %cst_20 {dimension_numbers = #tpu.dot_dimension_numbers<[1], [0], [0], [1], [0, 0, 1, 1], [], []>} : vector<8x8xf32>, vector<8x4xf32>, vector<8x4xf32> -> vector<8x4xf32>
    %c0_21 = arith.constant 0 : index
    %c0_22 = arith.constant 0 : index
    %33 = vector.load %arg12[%c0_21, %c0_22] : memref<8x32xf32, #tpu.memory_space<vmem>>, vector<8x4xf32>
    tpu.vector_store %arg12[%c0_21, %c0_22], %32 {strides = array<i32>} : memref<8x32xf32, #tpu.memory_space<vmem>>, vector<8x4xf32>,
    %34 = vector.extract_strided_slice %11 {offsets = [0, 4], sizes = [8, 4], strides = [1, 1]} : vector<8x32xf32> to vector<8x4xf32>
    %35 = vector.extract_strided_slice %12 {offsets = [0, 4], sizes = [8, 4], strides = [1, 1]} : vector<8x32xf32> to vector<8x4xf32>
    %cst_23 = arith.constant dense<0.000000e+00> : vector<8x8xf32>
    %36 = tpu.matmul %34, %35, %cst_23 {dimension_numbers = #tpu.dot_dimension_numbers<[1], [1], [0], [0], [0, 0, 1, 0], [], []>} : vector<8x4xf32>, vector<8x4xf32>, vector<8x8xf32> -> vector<8x8xf32>
    %cst_24 = arith.constant dense<0xFF800000> : vector<8xf32>
    %37 = vector.multi_reduction <maximumf>, %36, %cst_24 [1] : vector<8x8xf32> to vector<8xf32>
    %38 = vector.shape_cast %37 : vector<8xf32> to vector<8x1xf32>
    %39 = vector.broadcast %38 : vector<8x1xf32> to vector<8x8xf32>
    %40 = arith.subf %36, %39 : vector<8x8xf32>
    %41 = math.exp %40 : vector<8x8xf32>
    %cst_25 = arith.constant dense<0.000000e+00> : vector<8xf32>
    %42 = vector.multi_reduction <add>, %41, %cst_25 [1] : vector<8x8xf32> to vector<8xf32>
    %43 = vector.shape_cast %42 : vector<8xf32> to vector<8x1xf32>
    %cst_26 = arith.constant 1.000000e+00 : f32
    %44 = vector.broadcast %cst_26 : f32 to vector<8x1xf32>
    %45 = arith.divf %44, %43 : vector<8x1xf32>
    %46 = vector.broadcast %45 : vector<8x1xf32> to vector<8x8xf32>
    %47 = arith.mulf %41, %46 : vector<8x8xf32>
    %c0_27 = arith.constant 0 : index
    %c1 = arith.constant 1 : index
    %c0_28 = arith.constant 0 : index
    %c0_29 = arith.constant 0 : index
    %48 = vector.load %arg9[%c0_27, %c1, %c0_28, %c0_29] : memref<1x8x8x8xf32, #tpu.memory_space<vmem>>, vector<1x1x8x8xf32>
    %49 = vector.shape_cast %48 : vector<1x1x8x8xf32> to vector<8x8xf32>
    %50 = vector.shape_cast %47 : vector<8x8xf32> to vector<1x1x8x8xf32>
    tpu.vector_store %arg9[%c0_27, %c1, %c0_28, %c0_29], %50 {strides = array<i32>} : memref<1x8x8x8xf32, #tpu.memory_space<vmem>>, vector<1x1x8x8xf32>,
    %51 = vector.extract_strided_slice %13 {offsets = [0, 4], sizes = [8, 4], strides = [1, 1]} : vector<8x32xf32> to vector<8x4xf32>
    %cst_30 = arith.constant dense<0.000000e+00> : vector<8x4xf32>
    %52 = tpu.matmul %47, %51, %cst_30 {dimension_numbers = #tpu.dot_dimension_numbers<[1], [0], [0], [1], [0, 0, 1, 1], [], []>} : vector<8x8xf32>, vector<8x4xf32>, vector<8x4xf32> -> vector<8x4xf32>
    %c0_31 = arith.constant 0 : index
    %c4 = arith.constant 4 : index
    %53 = vector.load %arg12[%c0_31, %c4] : memref<8x32xf32, #tpu.memory_space<vmem>>, vector<8x4xf32>
    tpu.vector_store %arg12[%c0_31, %c4], %52 {strides = array<i32>} : memref<8x32xf32, #tpu.memory_space<vmem>>, vector<8x4xf32>,
    %54 = vector.extract_strided_slice %11 {offsets = [0, 8], sizes = [8, 4], strides = [1, 1]} : vector<8x32xf32> to vector<8x4xf32>
    %55 = vector.extract_strided_slice %12 {offsets = [0, 8], sizes = [8, 4], strides = [1, 1]} : vector<8x32xf32> to vector<8x4xf32>
    %cst_32 = arith.constant dense<0.000000e+00> : vector<8x8xf32>
    %56 = tpu.matmul %54, %55, %cst_32 {dimension_numbers = #tpu.dot_dimension_numbers<[1], [1], [0], [0], [0, 0, 1, 0], [], []>} : vector<8x4xf32>, vector<8x4xf32>, vector<8x8xf32> -> vector<8x8xf32>
    %cst_33 = arith.constant dense<0xFF800000> : vector<8xf32>
    %57 = vector.multi_reduction <maximumf>, %56, %cst_33 [1] : vector<8x8xf32> to vector<8xf32>
    %58 = vector.shape_cast %57 : vector<8xf32> to vector<8x1xf32>
    %59 = vector.broadcast %58 : vector<8x1xf32> to vector<8x8xf32>
    %60 = arith.subf %56, %59 : vector<8x8xf32>
    %61 = math.exp %60 : vector<8x8xf32>
    %cst_34 = arith.constant dense<0.000000e+00> : vector<8xf32>
    %62 = vector.multi_reduction <add>, %61, %cst_34 [1] : vector<8x8xf32> to vector<8xf32>
    %63 = vector.shape_cast %62 : vector<8xf32> to vector<8x1xf32>
    %cst_35 = arith.constant 1.000000e+00 : f32
    %64 = vector.broadcast %cst_35 : f32 to vector<8x1xf32>
    %65 = arith.divf %64, %63 : vector<8x1xf32>
    %66 = vector.broadcast %65 : vector<8x1xf32> to vector<8x8xf32>
    %67 = arith.mulf %61, %66 : vector<8x8xf32>
    %c0_36 = arith.constant 0 : index
    %c2 = arith.constant 2 : index
    %c0_37 = arith.constant 0 : index
    %c0_38 = arith.constant 0 : index
    %68 = vector.load %arg9[%c0_36, %c2, %c0_37, %c0_38] : memref<1x8x8x8xf32, #tpu.memory_space<vmem>>, vector<1x1x8x8xf32>
    %69 = vector.shape_cast %68 : vector<1x1x8x8xf32> to vector<8x8xf32>
    %70 = vector.shape_cast %67 : vector<8x8xf32> to vector<1x1x8x8xf32>
    tpu.vector_store %arg9[%c0_36, %c2, %c0_37, %c0_38], %70 {strides = array<i32>} : memref<1x8x8x8xf32, #tpu.memory_space<vmem>>, vector<1x1x8x8xf32>,
    %71 = vector.extract_strided_slice %13 {offsets = [0, 8], sizes = [8, 4], strides = [1, 1]} : vector<8x32xf32> to vector<8x4xf32>
    %cst_39 = arith.constant dense<0.000000e+00> : vector<8x4xf32>
    %72 = tpu.matmul %67, %71, %cst_39 {dimension_numbers = #tpu.dot_dimension_numbers<[1], [0], [0], [1], [0, 0, 1, 1], [], []>} : vector<8x8xf32>, vector<8x4xf32>, vector<8x4xf32> -> vector<8x4xf32>
    %c0_40 = arith.constant 0 : index
    %c8 = arith.constant 8 : index
    %73 = vector.load %arg12[%c0_40, %c8] : memref<8x32xf32, #tpu.memory_space<vmem>>, vector<8x4xf32>
    tpu.vector_store %arg12[%c0_40, %c8], %72 {strides = array<i32>} : memref<8x32xf32, #tpu.memory_space<vmem>>, vector<8x4xf32>,
    %74 = vector.extract_strided_slice %11 {offsets = [0, 12], sizes = [8, 4], strides = [1, 1]} : vector<8x32xf32> to vector<8x4xf32>
    %75 = vector.extract_strided_slice %12 {offsets = [0, 12], sizes = [8, 4], strides = [1, 1]} : vector<8x32xf32> to vector<8x4xf32>
    %cst_41 = arith.constant dense<0.000000e+00> : vector<8x8xf32>
    %76 = tpu.matmul %74, %75, %cst_41 {dimension_numbers = #tpu.dot_dimension_numbers<[1], [1], [0], [0], [0, 0, 1, 0], [], []>} : vector<8x4xf32>, vector<8x4xf32>, vector<8x8xf32> -> vector<8x8xf32>
    %cst_42 = arith.constant dense<0xFF800000> : vector<8xf32>
    %77 = vector.multi_reduction <maximumf>, %76, %cst_42 [1] : vector<8x8xf32> to vector<8xf32>
    %78 = vector.shape_cast %77 : vector<8xf32> to vector<8x1xf32>
    %79 = vector.broadcast %78 : vector<8x1xf32> to vector<8x8xf32>
    %80 = arith.subf %76, %79 : vector<8x8xf32>
    %81 = math.exp %80 : vector<8x8xf32>
    %cst_43 = arith.constant dense<0.000000e+00> : vector<8xf32>
    %82 = vector.multi_reduction <add>, %81, %cst_43 [1] : vector<8x8xf32> to vector<8xf32>
    %83 = vector.shape_cast %82 : vector<8xf32> to vector<8x1xf32>
    %cst_44 = arith.constant 1.000000e+00 : f32
    %84 = vector.broadcast %cst_44 : f32 to vector<8x1xf32>
    %85 = arith.divf %84, %83 : vector<8x1xf32>
    %86 = vector.broadcast %85 : vector<8x1xf32> to vector<8x8xf32>
    %87 = arith.mulf %81, %86 : vector<8x8xf32>
    %c0_45 = arith.constant 0 : index
    %c3 = arith.constant 3 : index
    %c0_46 = arith.constant 0 : index
    %c0_47 = arith.constant 0 : index
    %88 = vector.load %arg9[%c0_45, %c3, %c0_46, %c0_47] : memref<1x8x8x8xf32, #tpu.memory_space<vmem>>, vector<1x1x8x8xf32>
    %89 = vector.shape_cast %88 : vector<1x1x8x8xf32> to vector<8x8xf32>
    %90 = vector.shape_cast %87 : vector<8x8xf32> to vector<1x1x8x8xf32>
    tpu.vector_store %arg9[%c0_45, %c3, %c0_46, %c0_47], %90 {strides = array<i32>} : memref<1x8x8x8xf32, #tpu.memory_space<vmem>>, vector<1x1x8x8xf32>,
    %91 = vector.extract_strided_slice %13 {offsets = [0, 12], sizes = [8, 4], strides = [1, 1]} : vector<8x32xf32> to vector<8x4xf32>
    %cst_48 = arith.constant dense<0.000000e+00> : vector<8x4xf32>
    %92 = tpu.matmul %87, %91, %cst_48 {dimension_numbers = #tpu.dot_dimension_numbers<[1], [0], [0], [1], [0, 0, 1, 1], [], []>} : vector<8x8xf32>, vector<8x4xf32>, vector<8x4xf32> -> vector<8x4xf32>
    %c0_49 = arith.constant 0 : index
    %c12 = arith.constant 12 : index
    %93 = vector.load %arg12[%c0_49, %c12] : memref<8x32xf32, #tpu.memory_space<vmem>>, vector<8x4xf32>
    tpu.vector_store %arg12[%c0_49, %c12], %92 {strides = array<i32>} : memref<8x32xf32, #tpu.memory_space<vmem>>, vector<8x4xf32>,
    %94 = vector.extract_strided_slice %11 {offsets = [0, 16], sizes = [8, 4], strides = [1, 1]} : vector<8x32xf32> to vector<8x4xf32>
    %95 = vector.extract_strided_slice %12 {offsets = [0, 16], sizes = [8, 4], strides = [1, 1]} : vector<8x32xf32> to vector<8x4xf32>
    %cst_50 = arith.constant dense<0.000000e+00> : vector<8x8xf32>
    %96 = tpu.matmul %94, %95, %cst_50 {dimension_numbers = #tpu.dot_dimension_numbers<[1], [1], [0], [0], [0, 0, 1, 0], [], []>} : vector<8x4xf32>, vector<8x4xf32>, vector<8x8xf32> -> vector<8x8xf32>
    %cst_51 = arith.constant dense<0xFF800000> : vector<8xf32>
    %97 = vector.multi_reduction <maximumf>, %96, %cst_51 [1] : vector<8x8xf32> to vector<8xf32>
    %98 = vector.shape_cast %97 : vector<8xf32> to vector<8x1xf32>
    %99 = vector.broadcast %98 : vector<8x1xf32> to vector<8x8xf32>
    %100 = arith.subf %96, %99 : vector<8x8xf32>
    %101 = math.exp %100 : vector<8x8xf32>
    %cst_52 = arith.constant dense<0.000000e+00> : vector<8xf32>
    %102 = vector.multi_reduction <add>, %101, %cst_52 [1] : vector<8x8xf32> to vector<8xf32>
    %103 = vector.shape_cast %102 : vector<8xf32> to vector<8x1xf32>
    %cst_53 = arith.constant 1.000000e+00 : f32
    %104 = vector.broadcast %cst_53 : f32 to vector<8x1xf32>
    %105 = arith.divf %104, %103 : vector<8x1xf32>
    %106 = vector.broadcast %105 : vector<8x1xf32> to vector<8x8xf32>
    %107 = arith.mulf %101, %106 : vector<8x8xf32>
    %c0_54 = arith.constant 0 : index
    %c4_55 = arith.constant 4 : index
    %c0_56 = arith.constant 0 : index
    %c0_57 = arith.constant 0 : index
    %108 = vector.load %arg9[%c0_54, %c4_55, %c0_56, %c0_57] : memref<1x8x8x8xf32, #tpu.memory_space<vmem>>, vector<1x1x8x8xf32>
    %109 = vector.shape_cast %108 : vector<1x1x8x8xf32> to vector<8x8xf32>
    %110 = vector.shape_cast %107 : vector<8x8xf32> to vector<1x1x8x8xf32>
    tpu.vector_store %arg9[%c0_54, %c4_55, %c0_56, %c0_57], %110 {strides = array<i32>} : memref<1x8x8x8xf32, #tpu.memory_space<vmem>>, vector<1x1x8x8xf32>,
    %111 = vector.extract_strided_slice %13 {offsets = [0, 16], sizes = [8, 4], strides = [1, 1]} : vector<8x32xf32> to vector<8x4xf32>
    %cst_58 = arith.constant dense<0.000000e+00> : vector<8x4xf32>
    %112 = tpu.matmul %107, %111, %cst_58 {dimension_numbers = #tpu.dot_dimension_numbers<[1], [0], [0], [1], [0, 0, 1, 1], [], []>} : vector<8x8xf32>, vector<8x4xf32>, vector<8x4xf32> -> vector<8x4xf32>
    %c0_59 = arith.constant 0 : index
    %c16 = arith.constant 16 : index
    %113 = vector.load %arg12[%c0_59, %c16] : memref<8x32xf32, #tpu.memory_space<vmem>>, vector<8x4xf32>
    tpu.vector_store %arg12[%c0_59, %c16], %112 {strides = array<i32>} : memref<8x32xf32, #tpu.memory_space<vmem>>, vector<8x4xf32>,
    %114 = vector.extract_strided_slice %11 {offsets = [0, 20], sizes = [8, 4], strides = [1, 1]} : vector<8x32xf32> to vector<8x4xf32>
    %115 = vector.extract_strided_slice %12 {offsets = [0, 20], sizes = [8, 4], strides = [1, 1]} : vector<8x32xf32> to vector<8x4xf32>
    %cst_60 = arith.constant dense<0.000000e+00> : vector<8x8xf32>
    %116 = tpu.matmul %114, %115, %cst_60 {dimension_numbers = #tpu.dot_dimension_numbers<[1], [1], [0], [0], [0, 0, 1, 0], [], []>} : vector<8x4xf32>, vector<8x4xf32>, vector<8x8xf32> -> vector<8x8xf32>
    %cst_61 = arith.constant dense<0xFF800000> : vector<8xf32>
    %117 = vector.multi_reduction <maximumf>, %116, %cst_61 [1] : vector<8x8xf32> to vector<8xf32>
    %118 = vector.shape_cast %117 : vector<8xf32> to vector<8x1xf32>
    %119 = vector.broadcast %118 : vector<8x1xf32> to vector<8x8xf32>
    %120 = arith.subf %116, %119 : vector<8x8xf32>
    %121 = math.exp %120 : vector<8x8xf32>
    %cst_62 = arith.constant dense<0.000000e+00> : vector<8xf32>
    %122 = vector.multi_reduction <add>, %121, %cst_62 [1] : vector<8x8xf32> to vector<8xf32>
    %123 = vector.shape_cast %122 : vector<8xf32> to vector<8x1xf32>
    %cst_63 = arith.constant 1.000000e+00 : f32
    %124 = vector.broadcast %cst_63 : f32 to vector<8x1xf32>
    %125 = arith.divf %124, %123 : vector<8x1xf32>
    %126 = vector.broadcast %125 : vector<8x1xf32> to vector<8x8xf32>
    %127 = arith.mulf %121, %126 : vector<8x8xf32>
    %c0_64 = arith.constant 0 : index
    %c5 = arith.constant 5 : index
    %c0_65 = arith.constant 0 : index
    %c0_66 = arith.constant 0 : index
    %128 = vector.load %arg9[%c0_64, %c5, %c0_65, %c0_66] : memref<1x8x8x8xf32, #tpu.memory_space<vmem>>, vector<1x1x8x8xf32>
    %129 = vector.shape_cast %128 : vector<1x1x8x8xf32> to vector<8x8xf32>
    %130 = vector.shape_cast %127 : vector<8x8xf32> to vector<1x1x8x8xf32>
    tpu.vector_store %arg9[%c0_64, %c5, %c0_65, %c0_66], %130 {strides = array<i32>} : memref<1x8x8x8xf32, #tpu.memory_space<vmem>>, vector<1x1x8x8xf32>,
    %131 = vector.extract_strided_slice %13 {offsets = [0, 20], sizes = [8, 4], strides = [1, 1]} : vector<8x32xf32> to vector<8x4xf32>
    %cst_67 = arith.constant dense<0.000000e+00> : vector<8x4xf32>
    %132 = tpu.matmul %127, %131, %cst_67 {dimension_numbers = #tpu.dot_dimension_numbers<[1], [0], [0], [1], [0, 0, 1, 1], [], []>} : vector<8x8xf32>, vector<8x4xf32>, vector<8x4xf32> -> vector<8x4xf32>
    %c0_68 = arith.constant 0 : index
    %c20 = arith.constant 20 : index
    %133 = vector.load %arg12[%c0_68, %c20] : memref<8x32xf32, #tpu.memory_space<vmem>>, vector<8x4xf32>
    tpu.vector_store %arg12[%c0_68, %c20], %132 {strides = array<i32>} : memref<8x32xf32, #tpu.memory_space<vmem>>, vector<8x4xf32>,
    %134 = vector.extract_strided_slice %11 {offsets = [0, 24], sizes = [8, 4], strides = [1, 1]} : vector<8x32xf32> to vector<8x4xf32>
    %135 = vector.extract_strided_slice %12 {offsets = [0, 24], sizes = [8, 4], strides = [1, 1]} : vector<8x32xf32> to vector<8x4xf32>
    %cst_69 = arith.constant dense<0.000000e+00> : vector<8x8xf32>
    %136 = tpu.matmul %134, %135, %cst_69 {dimension_numbers = #tpu.dot_dimension_numbers<[1], [1], [0], [0], [0, 0, 1, 0], [], []>} : vector<8x4xf32>, vector<8x4xf32>, vector<8x8xf32> -> vector<8x8xf32>
    %cst_70 = arith.constant dense<0xFF800000> : vector<8xf32>
    %137 = vector.multi_reduction <maximumf>, %136, %cst_70 [1] : vector<8x8xf32> to vector<8xf32>
    %138 = vector.shape_cast %137 : vector<8xf32> to vector<8x1xf32>
    %139 = vector.broadcast %138 : vector<8x1xf32> to vector<8x8xf32>
    %140 = arith.subf %136, %139 : vector<8x8xf32>
    %141 = math.exp %140 : vector<8x8xf32>
    %cst_71 = arith.constant dense<0.000000e+00> : vector<8xf32>
    %142 = vector.multi_reduction <add>, %141, %cst_71 [1] : vector<8x8xf32> to vector<8xf32>
    %143 = vector.shape_cast %142 : vector<8xf32> to vector<8x1xf32>
    %cst_72 = arith.constant 1.000000e+00 : f32
    %144 = vector.broadcast %cst_72 : f32 to vector<8x1xf32>
    %145 = arith.divf %144, %143 : vector<8x1xf32>
    %146 = vector.broadcast %145 : vector<8x1xf32> to vector<8x8xf32>
    %147 = arith.mulf %141, %146 : vector<8x8xf32>
    %c0_73 = arith.constant 0 : index
    %c6 = arith.constant 6 : index
    %c0_74 = arith.constant 0 : index
    %c0_75 = arith.constant 0 : index
    %148 = vector.load %arg9[%c0_73, %c6, %c0_74, %c0_75] : memref<1x8x8x8xf32, #tpu.memory_space<vmem>>, vector<1x1x8x8xf32>
    %149 = vector.shape_cast %148 : vector<1x1x8x8xf32> to vector<8x8xf32>
    %150 = vector.shape_cast %147 : vector<8x8xf32> to vector<1x1x8x8xf32>
    tpu.vector_store %arg9[%c0_73, %c6, %c0_74, %c0_75], %150 {strides = array<i32>} : memref<1x8x8x8xf32, #tpu.memory_space<vmem>>, vector<1x1x8x8xf32>,
    %151 = vector.extract_strided_slice %13 {offsets = [0, 24], sizes = [8, 4], strides = [1, 1]} : vector<8x32xf32> to vector<8x4xf32>
    %cst_76 = arith.constant dense<0.000000e+00> : vector<8x4xf32>
    %152 = tpu.matmul %147, %151, %cst_76 {dimension_numbers = #tpu.dot_dimension_numbers<[1], [0], [0], [1], [0, 0, 1, 1], [], []>} : vector<8x8xf32>, vector<8x4xf32>, vector<8x4xf32> -> vector<8x4xf32>
    %c0_77 = arith.constant 0 : index
    %c24 = arith.constant 24 : index
    %153 = vector.load %arg12[%c0_77, %c24] : memref<8x32xf32, #tpu.memory_space<vmem>>, vector<8x4xf32>
    tpu.vector_store %arg12[%c0_77, %c24], %152 {strides = array<i32>} : memref<8x32xf32, #tpu.memory_space<vmem>>, vector<8x4xf32>,
    %154 = vector.extract_strided_slice %11 {offsets = [0, 28], sizes = [8, 4], strides = [1, 1]} : vector<8x32xf32> to vector<8x4xf32>
    %155 = vector.extract_strided_slice %12 {offsets = [0, 28], sizes = [8, 4], strides = [1, 1]} : vector<8x32xf32> to vector<8x4xf32>
    %cst_78 = arith.constant dense<0.000000e+00> : vector<8x8xf32>
    %156 = tpu.matmul %154, %155, %cst_78 {dimension_numbers = #tpu.dot_dimension_numbers<[1], [1], [0], [0], [0, 0, 1, 0], [], []>} : vector<8x4xf32>, vector<8x4xf32>, vector<8x8xf32> -> vector<8x8xf32>
    %cst_79 = arith.constant dense<0xFF800000> : vector<8xf32>
    %157 = vector.multi_reduction <maximumf>, %156, %cst_79 [1] : vector<8x8xf32> to vector<8xf32>
    %158 = vector.shape_cast %157 : vector<8xf32> to vector<8x1xf32>
    %159 = vector.broadcast %158 : vector<8x1xf32> to vector<8x8xf32>
    %160 = arith.subf %156, %159 : vector<8x8xf32>
    %161 = math.exp %160 : vector<8x8xf32>
    %cst_80 = arith.constant dense<0.000000e+00> : vector<8xf32>
    %162 = vector.multi_reduction <add>, %161, %cst_80 [1] : vector<8x8xf32> to vector<8xf32>
    %163 = vector.shape_cast %162 : vector<8xf32> to vector<8x1xf32>
    %cst_81 = arith.constant 1.000000e+00 : f32
    %164 = vector.broadcast %cst_81 : f32 to vector<8x1xf32>
    %165 = arith.divf %164, %163 : vector<8x1xf32>
    %166 = vector.broadcast %165 : vector<8x1xf32> to vector<8x8xf32>
    %167 = arith.mulf %161, %166 : vector<8x8xf32>
    %c0_82 = arith.constant 0 : index
    %c7 = arith.constant 7 : index
    %c0_83 = arith.constant 0 : index
    %c0_84 = arith.constant 0 : index
    %168 = vector.load %arg9[%c0_82, %c7, %c0_83, %c0_84] : memref<1x8x8x8xf32, #tpu.memory_space<vmem>>, vector<1x1x8x8xf32>
    %169 = vector.shape_cast %168 : vector<1x1x8x8xf32> to vector<8x8xf32>
    %170 = vector.shape_cast %167 : vector<8x8xf32> to vector<1x1x8x8xf32>
    tpu.vector_store %arg9[%c0_82, %c7, %c0_83, %c0_84], %170 {strides = array<i32>} : memref<1x8x8x8xf32, #tpu.memory_space<vmem>>, vector<1x1x8x8xf32>,
    %171 = vector.extract_strided_slice %13 {offsets = [0, 28], sizes = [8, 4], strides = [1, 1]} : vector<8x32xf32> to vector<8x4xf32>
    %cst_85 = arith.constant dense<0.000000e+00> : vector<8x4xf32>
    %172 = tpu.matmul %167, %171, %cst_85 {dimension_numbers = #tpu.dot_dimension_numbers<[1], [0], [0], [1], [0, 0, 1, 1], [], []>} : vector<8x8xf32>, vector<8x4xf32>, vector<8x4xf32> -> vector<8x4xf32>
    %c0_86 = arith.constant 0 : index
    %c28 = arith.constant 28 : index
    %173 = vector.load %arg12[%c0_86, %c28] : memref<8x32xf32, #tpu.memory_space<vmem>>, vector<8x4xf32>
    tpu.vector_store %arg12[%c0_86, %c28], %172 {strides = array<i32>} : memref<8x32xf32, #tpu.memory_space<vmem>>, vector<8x4xf32>,
    %c0_87 = arith.constant 0 : index
    %c0_88 = arith.constant 0 : index
    %174 = vector.load %arg12[%c0_87, %c0_88] : memref<8x32xf32, #tpu.memory_space<vmem>>, vector<8x32xf32>
    %c0_89 = arith.constant 0 : index
    %c0_90 = arith.constant 0 : index
    %175 = vector.load %arg6[%c0_89, %c0_90] : memref<32x32xf32, #tpu.memory_space<vmem>>, vector<32x32xf32>
    %cst_91 = arith.constant dense<0.000000e+00> : vector<8x32xf32>
    %176 = tpu.matmul %174, %175, %cst_91 {dimension_numbers = #tpu.dot_dimension_numbers<[1], [0], [0], [1], [0, 0, 1, 1], [], []>} : vector<8x32xf32>, vector<32x32xf32>, vector<8x32xf32> -> vector<8x32xf32>
    %c0_92 = arith.constant 0 : index
    %c0_93 = arith.constant 0 : index
    %177 = vector.load %arg7[%c0_92, %c0_93] : memref<1x32xf32, #tpu.memory_space<vmem>>, vector<1x32xf32>
    %178 = vector.broadcast %177 : vector<1x32xf32> to vector<8x32xf32>
    %179 = arith.addf %176, %178 : vector<8x32xf32>
    %c0_94 = arith.constant 0 : index
    %c0_95 = arith.constant 0 : index
    %c0_96 = arith.constant 0 : index
    %180 = vector.load %arg8[%c0_94, %c0_95, %c0_96] : memref<1x8x32xf32, #tpu.memory_space<vmem>>, vector<1x8x32xf32>
    %181 = vector.shape_cast %180 : vector<1x8x32xf32> to vector<8x32xf32>
    %182 = vector.shape_cast %179 : vector<8x32xf32> to vector<1x8x32xf32>
    tpu.vector_store %arg8[%c0_94, %c0_95, %c0_96], %182 {strides = array<i32>} : memref<1x8x32xf32, #tpu.memory_space<vmem>>, vector<1x8x32xf32>,
    return
  }
  func.func @transform_0(%arg0: i32, %arg1: i32) -> (i32, i32, i32) {
    %c0_i32 = arith.constant 0 : i32
    %c0_i32_0 = arith.constant 0 : i32
    return %arg0, %arg1, %c0_i32 : i32, i32, i32
  }
  func.func @transform_1(%arg0: i32, %arg1: i32) -> (i32, i32, i32) {
    %c0_i32 = arith.constant 0 : i32
    %c0_i32_0 = arith.constant 0 : i32
    %c0_i32_1 = arith.constant 0 : i32
    return %arg0, %c0_i32, %c0_i32_0 : i32, i32, i32
  }
  func.func @transform_2(%arg0: i32, %arg1: i32) -> (i32, i32) {
    %c0_i32 = arith.constant 0 : i32
    %c0_i32_0 = arith.constant 0 : i32
    %c0_i32_1 = arith.constant 0 : i32
    return %c0_i32, %c0_i32_0 : i32, i32
  }
  func.func @transform_3(%arg0: i32, %arg1: i32) -> (i32, i32) {
    %c0_i32 = arith.constant 0 : i32
    %c0_i32_0 = arith.constant 0 : i32
    %c0_i32_1 = arith.constant 0 : i32
    return %c0_i32, %c0_i32_0 : i32, i32
  }
  func.func @transform_4(%arg0: i32, %arg1: i32) -> (i32, i32) {
    %c0_i32 = arith.constant 0 : i32
    %c0_i32_0 = arith.constant 0 : i32
    %c0_i32_1 = arith.constant 0 : i32
    return %c0_i32, %c0_i32_0 : i32, i32
  }
  func.func @transform_5(%arg0: i32, %arg1: i32) -> (i32, i32) {
    %c0_i32 = arith.constant 0 : i32
    %c0_i32_0 = arith.constant 0 : i32
    %c0_i32_1 = arith.constant 0 : i32
    return %c0_i32, %c0_i32_0 : i32, i32
  }
  func.func @transform_6(%arg0: i32, %arg1: i32) -> (i32, i32, i32) {
    %c0_i32 = arith.constant 0 : i32
    %c0_i32_0 = arith.constant 0 : i32
    return %arg0, %arg1, %c0_i32 : i32, i32, i32
  }
  func.func @transform_7(%arg0: i32, %arg1: i32) -> (i32, i32, i32, i32) {
    %c0_i32 = arith.constant 0 : i32
    %c0_i32_0 = arith.constant 0 : i32
    %c0_i32_1 = arith.constant 0 : i32
    return %arg0, %c0_i32, %arg1, %c0_i32_0 : i32, i32, i32, i32
  }
}

</mosaic_0001>

<bundles_post_ra>
// kernel: tpu_custom_call.1
= control target key start
LH: loop header
LB: loop body
LE: loop exit
PB: predicated region body
PF: predicated region fallthrough
CT: control target
= control target key end

     0   :  { %s3450_s0 = inlined_call_operand.hbm [shape: f32[2,8,32], index: 0, kind: input, shape index: {}]   ;;  %s3451_s1 = inlined_call_operand.hbm [shape: f32[2,8,32], index: 1, kind: input, shape index: {}]   ;;  %s3452_s2 = inlined_call_operand.hbm [shape: f32[32,96], index: 2, kind: input, shape index: {}]   ;;  %s3453_s3 = inlined_call_operand.vmem [shape: f32[1,96], index: 3, kind: input, shape index: {}]   ;;  %s3454_s4 = inlined_call_operand.hbm [shape: f32[32,32], index: 4, kind: input, shape index: {}]   ;;  %s3455_s5 = inlined_call_operand.vmem [shape: f32[1,32], index: 5, kind: input, shape index: {}]   ;;  %s3456_s6 = inlined_call_operand.hbm [shape: f32[2,8,32], index: 6, kind: output, shape index: {0}]   ;;  %s3457_s7 = inlined_call_operand.hbm [shape: f32[2,8,8,8], index: 7, kind: output, shape index: {1}]  }
   0x1   :  { %3460 = sst [smem:[#allocation23_spill]] %s3450_s0 }
   0x2   :  { %3461 = sst [smem:[#allocation24_spill]] %s3451_s1 }
   0x3   :  { %3462 = sst [smem:[#allocation25_spill]] %s3452_s2 }
   0x4   :  { %3463 = sst [smem:[#allocation26_spill]] %s3454_s4 }
   0x5   :  { %13 = vsyncpa [#allocation6], 0 }
   0x6   :  { %15 = vsyncpa [#allocation6 + $0x1], 0 }
   0x7   :  { %16 = vsyncpa [#allocation9], 0 }
   0x8   :  { %18 = vsyncpa [#allocation9 + $0x1], 0 }
   0x9   :  { %19 = vsyncpa [#allocation12], 0 }
   0xa   :  { %20 = vsyncpa [#allocation7], 0 }
   0xb   :  { %22 = vsyncpa [#allocation7 + $0x1], 0 }
   0xc   :  { %23 = vsyncpa [#allocation15], 0 }
   0xd   :  { %25 = vsyncpa [#allocation15 + $0x1], 0  ;;  %s3021_s24 = smov 0   ;;  %s3023_s25 = smov 0  }
   0xe   :  { %s3025_s26 = smov 0   ;;  %s3027_s27 = smov 0  }
   0xf   :  { %s3029_s28 = smov 0   ;;  %s3031_s29 = smov 0  }
  0x10 LB: > { %s3052_s30 = sadd.s32 4294967295, %s2952_s29   ;;  %s2338_s8 = sadd.s32 4294967294, %s2952_s29   ;;  %s2952_s29 = sphi %s3031_s29, %s31_s29   ;;  %s2948_s28 = sphi %s3029_s28, %s3487_s28   ;;  %s2944_s27 = sphi %s3027_s27, %s3486_s27   ;;  %s2940_s26 = sphi %s3025_s26, %s3485_s26   ;;  %s2936_s25 = sphi %s3023_s25, %s3484_s25   ;;  %s2932_s24 = sphi %s3021_s24, %s3483_s24  }
  0x11   : > { %p65_p0 = scmp.ne.s32.totalorder %s2936_s25, %s2932_s24  ;;  %p3458_p1 = scmp.eq.s32.totalorder %s3052_s30, 0 }
  0x12   : > { %p207_p3 = scmp.eq.s32.totalorder %s2338_s8, 1  ;;  %p2339_p5 = scmp.ge.s32.totalorder %s2952_s29, 1 }
  0x13   : > { %p3061_p4 = por %p3458_p1, %p65_p0  ;;  %p242_p7 = scmp.lt.s32.totalorder %s2952_s29, 3 }
  0x14   : > { %p3066_p6 = por %p207_p3, %p65_p0  ;;  %s2954_s12 = smov [#allocation10]  }
  0x15   : > { %p3071_p8 = pnand %p2339_p5, %p242_p7  ;;  %s254_s13 = sshll.u32 %s2954_s12, 4  ;;  %s255_s13 = int_to_ptr.vmem [resolvable:$true] %s254_s13 }
  0x16   : > { %s3465_s10 = scalar_select %p3066_p6, 1, 0 }
  0x17   : > { %p2592_p9 = pneg %p3071_p8  ;;  %s2955_s15 = smov [#allocation11]  }
  0x18   : > { %s270_s16 = sshll.u32 %s2955_s15, 4  ;;  %s2733_s17 = scalar_lea.vmem %s255_s13, 512  ;;  %s271_s16 = int_to_ptr.vmem [resolvable:$true] %s270_s16 }
  0x19   : > { %p3080_p11 = pnand %p2592_p9, %p3458_p1  ;;  %p2734_p13 = scmp.ne.s32.totalorder %s255_s13, %s2733_s17 }
  0x1a   : > { %p2741_p5 = scmp.lt.s32.totalorder %s255_s13, %s255_s13  ;;  %p2742_p7 = scmp.lt.s32.totalorder %s2733_s17, %s2733_s17 }
  0x1b   : > { %p2724_p12 = pneg %p3080_p11 }
  0x1c   : > { %p2743_p10 = por %p2742_p7, %p2741_p5 }
  0x1d   : > { %p2736_p0 = pnand %p2734_p13, %p2724_p12 }
  0x1f   : > { %p2737_p3 = pneg %p2736_p0 }
  0x21   : > { %p2744_p9 = pnand %p2743_p10, %p2737_p3 }
  0x23   : > { %2747 = shalt.err (!%p2744_p9)
}
  0x24   : > { %s2956_s18 = smov 128   ;;  %s2957_s19 = smov 8  }
  0x25   : > { %s3468_s2 = sld [smem:[#allocation25_spill]]  ;;  %s2759_s22 = scalar_lea.vmem %s271_s16, 512 }
  0x26   : > { %p2760_p1 = scmp.ne.s32.totalorder %s271_s16, %s2759_s22  ;;  %p2767_p2 = scmp.lt.s32.totalorder %s271_s16, %s271_s16 }
  0x27   : > { %p2768_p6 = scmp.lt.s32.totalorder %s2759_s22, %s2759_s22 }
  0x28   : > { %p2762_p13 = pnand %p2760_p1, %p2724_p12 }
  0x29   : > { %p2769_p5 = por %p2768_p6, %p2767_p2 }
  0x2a   : > { %p2763_p0 = pneg %p2762_p13 }
  0x2b   : > { %2595 = dma.hbm_to_vmem [thread:$0]  (!%p3080_p11), %s3468_s2, 512, %s255_s13, [#allocation9], %s2956_s18, %s2956_s18, %s2957_s19  }
  0x2c   : > { %p2770_p10 = pnand %p2769_p5, %p2763_p0 }
  0x2e   : > { %2773 = shalt.err (!%p2770_p10)
}
  0x2f   : > { %s3469_s4 = sld [smem:[#allocation26_spill]]  ;;  %s43_s12 = sadd.s32 1, %s2948_s28 }
  0x30   : > { %s52_s13 = sadd.s32 1, %s2940_s26  ;;  %p45_p1 = scmp.ge.s32.totalorder %s43_s12, 2 }
  0x31   : > { %p59_p2 = scmp.ne.s32.totalorder %s2940_s26, %s2936_s25  ;;  %p60_p6 = scmp.eq.s32.totalorder %s2952_s29, 0 }
  0x32   : > { %p2615_p12 = scmp.lt.s32.totalorder %s2952_s29, 2  ;;  %s3489_s12 = smov (%p45_p1, %s43_s12), 0 }
  0x33   : > { %3470 = sst [smem:[#allocation22_spill]] %s3489_s12  ;;  %p61_p3 = por %p60_p6, %p59_p2 }
  0x34   : > { %p3471_p7 = scmp.eq.s32.totalorder %s3052_s30, 1  ;;  %s47_s15 = ssub.s32 %s2948_s28, %s3489_s12 }
  0x35   : > { %2598 = dma.hbm_to_vmem [thread:$0]  (!%p3080_p11), %s3469_s4, 512, %s271_s16, [#allocation12], %s2956_s18, %s2956_s18, %s2957_s19  }
  0x36   : > { %p3112_p9 = por %p3471_p7, %p59_p2  ;;  %s287_s17 = sand.u32 1, %s2940_s26  }
  0x37   : > { %p50_p13 = scmp.eq.s32.totalorder %s47_s15, 0  ;;  %s2343_s16 = sshll.u32 %s287_s17, 3 }
  0x38   : > { %s2344_s18 = sshll.u32 %s2948_s28, 7  ;;  %s3473_s0 = sld [smem:[#allocation23_spill]] }
  0x39   : > { %s3121_s19 = scalar_select %p50_p13, %s2940_s26, %s52_s13  }
  0x3a   : > { %s291_s23 = scalar_lea.vmem [#allocation5], %s2343_s16  ;;  %p3128_p11 = pnand %p2615_p12, %p61_p3 }
  0x3b   : > { %s299_s8 = sshll.u32 %s291_s23, 4  ;;  %s3475_s1 = sld [smem:[#allocation24_spill]]  ;;  %s300_s8 = int_to_ptr.vmem [resolvable:$true] %s299_s8 }
  0x3c   : > { %s288_s13 = scalar_lea.sflag [#allocation6], %s287_s17  ;;  %p2776_p0 = pneg %p3128_p11 }
  0x3d   : > { %s2787_s20 = scalar_lea.vmem %s300_s8, 128  ;;  %s2958_s21 = smov [#allocation5]  }
  0x3e   : > { %s297_s22 = scalar_lea.hbm %s3473_s0, %s2344_s18  ;;  %p2788_p5 = scmp.ne.s32.totalorder %s300_s8, %s2787_s20 }
  0x3f   : > { %s2792_s23 = sshll.u32 %s2958_s21, 4  ;;  %s2793_s23 = int_to_ptr.vmem [resolvable:$false] %s2792_s23 }
  0x40   : > { %p2790_p10 = pnand %p2788_p5, %p2776_p0  ;;  %s2794_s0 = scalar_lea.vmem %s2793_s23, 256 }
  0x41   : > { %s3135_s12 = scalar_lea.hbm %s3475_s1, %s2344_s18  ;;  %p2795_p2 = scmp.lt.s32.totalorder %s300_s8, %s2793_s23 }
  0x42   : > { %p2791_p1 = pneg %p2790_p10  ;;  %p2796_p6 = scmp.lt.s32.totalorder %s2794_s0, %s2787_s20 }
  0x44   : > { %p2797_p12 = por %p2796_p6, %p2795_p2 }
  0x46   : > { %p2798_p3 = pnand %p2797_p12, %p2791_p1 }
  0x48   : > { %2801 = shalt.err (!%p2798_p3)
}
  0x49   : > { %2602 = dma.hbm_to_vmem [thread:$0]  (!%p3128_p11), %s297_s22, 128, %s300_s8, %s288_s13  }
  0x4a   : > { %s306_s4 = sand.u32 1, %s2952_s29   ;;  %s310_s17 = scalar_lea.vmem [#allocation8], %s2343_s16 }
  0x4b   : > { %s317_s18 = sshll.u32 %s310_s17, 4  ;;  %s307_s15 = scalar_lea.sflag [#allocation9], %s306_s4  ;;  %s318_s18 = int_to_ptr.vmem [resolvable:$true] %s317_s18 }
  0x4c   : > { %s2815_s1 = scalar_lea.vmem %s318_s18, 128  ;;  %s2959_s0 = smov [#allocation8]  }
  0x4d   : > { %p2816_p7 = scmp.ne.s32.totalorder %s318_s18, %s2815_s1  ;;  %s2820_s20 = sshll.u32 %s2959_s0, 4  ;;  %s2821_s20 = int_to_ptr.vmem [resolvable:$false] %s2820_s20 }
  0x4e   : > { %s2822_s21 = scalar_lea.vmem %s2821_s20, 256  ;;  %p2823_p10 = scmp.lt.s32.totalorder %s318_s18, %s2821_s20 }
  0x4f   : > { %p2818_p13 = pnand %p2816_p7, %p2776_p0  ;;  %p2824_p1 = scmp.lt.s32.totalorder %s2822_s21, %s2815_s1 }
  0x51   : > { %p2819_p5 = pneg %p2818_p13  ;;  %p2825_p2 = por %p2824_p1, %p2823_p10 }
  0x53   : > { %p2826_p6 = pnand %p2825_p2, %p2819_p5 }
  0x55   : > { %2829 = shalt.err (!%p2826_p6)
}
  0x56   : > { %2605 = dma.hbm_to_vmem [thread:$0]  (!%p3128_p11), %s3135_s12, 128, %s318_s18, %s307_s15  }
  0x57   : > { %326 = sbr.rel (%p3071_p8) target bundleno = 2013 (0x7dd), region = 44  ;;  %s3154_s16 = sand.u32 (!%p3071_p8), 1, %s2936_s25  }
  0x58   : > { %s3157_s22 = sshll.u32 (!%p3071_p8), %s3154_s16, 3  ;;  %s329_s1 = scalar_lea.sflag (!%p3071_p8), [#allocation6], %s3154_s16 }
  0x59   : > { %s332_s8 = scalar_lea.vmem (!%p3071_p8), [#allocation5], %s3157_s22 }
  0x5c   : > { %2907 = dma.done.wait (%p3061_p4), %s329_s1, 128  }
  0x5d   : > { %2909 = vsyncadd (%p3061_p4), %s329_s1, 4294967168  ;;  %s337_s2 = sand.u32 1, %s3052_s30   ;;  %s341_s12 = scalar_lea.vmem [#allocation8], %s3157_s22 }
  0x5e   : > { %s338_s11 = scalar_lea.sflag [#allocation9], %s337_s2 }
  0x5f   : > { %2911 = dma.done.wait (%p3061_p4), %s338_s11, 128  }
  0x60   : > { %2913 = vsyncadd (%p3061_p4), %s338_s11, 4294967168  ;;  %p3476_p8 = scmp.eq.s32.totalorder %s3052_s30, 0 }
  0x62   : > { %2915 = dma.done.wait (%p3476_p8), [#allocation9], 512   ;;  %p3477_p11 = pmov %p3476_p8 }
  0x63   : > { %p3478_p0 = pmov %p3476_p8 }
  0x64   : > { %2917 = vsyncadd (%p3477_p11), [#allocation9], 4294966784 }
  0x65   : > { %2919 = dma.done.wait (%p3478_p0), [#allocation12], 512   ;;  %p3479_p12 = pmov %p3478_p0 }
  0x66   : > { %v2960_v0 = vmov 0.0   ;;  %vm2961_vm0 = vmmov 0   ;;  %v398_v1 = vld [vmem:[#allocation10 + $0x18] sm:$0xff]  ;;  %v396_v2 = vld [vmem:[#allocation10 + $0x8] sm:$0xff]  ;;  %s2962_s9 = smov 96   ;;  %v397_v3 = vld [vmem:[#allocation10 + $0x10] sm:$0xff] }
  0x67   : > { %2921 = vsyncadd (%p3479_p12), [#allocation12], 4294966784  ;;  %2452 = vmatprep.subr.mxu0 %v2960_v0  ;;  %2463 = vmatprep.subr.mxu1 %v2960_v0  ;;  %v395_v4 = vld [vmem:[#allocation10] sm:$0xff]  ;;  %v3188_v5 = vld [vmem:[%s3453_s3] ss:$0 sm:$0xff]  ;;  %s2963_s23 = smov 64  }
  0x68   : > { %2460 = vmatprep.mubr.msk.f32.mxu0 %vm2961_vm0, %v2960_v0  ;;  %2471 = vmatprep.mubr.msk.f32.mxu1 %vm2961_vm0, %v2960_v0  ;;  %v394_v10 = vld [vmem:[%s341_s12] sm:$0xff]  ;;  %vm424_vm1 = vcmask 261120   ;;  %v585_v12 = vld [vmem:[%s332_s8] sm:$0xff]  ;;  %vm674_vm2 = vcmask 31744   ;;  %vm751_vm3 = vcmask 64512   ;;  %s2964_s4 = smov 124  }
  0x69   : > { %415 = vrot.lane.b32.xlu0 %v398_v1, %s2962_s9  ;;  %411 = vrot.lane.b32.xlu1 %v396_v2, %s2962_s9  ;;  %s2965_s17 = smov 120   ;;  %s2966_s18 = smov 116   ;;  %vm1012_vm4 = vcmask 64544   ;;  %vm1186_vm5 = vcmask 97344   ;;  %vm1360_vm6 = vcmask 130144   ;;  %vm1534_vm7 = vcmask 162944  }
  0x6a   : > { %s2967_s15 = smov 112   ;;  %s2968_s0 = smov 108   ;;  %vm1708_vm8 = vcmask 195744   ;;  %vm1882_vm9 = vcmask 228544   ;;  %vm2056_vm10 = vcmask 261344  }
  0x6b   : > { %s2969_s20 = smov 104   ;;  %s2970_s21 = smov 100  }
  0x6c   : > { %s2353_s1 = sshll.u32 %s3154_s16, 6  ;;  %s2971_s2 = smov 4  }
  0x6d   : > { %413 = vrot.lane.b32.xlu0 %v397_v3, %s2962_s9  ;;  %409 = vrot.lane.b32.xlu1 %v395_v4, %s2962_s9  ;;  %s3259_s8 = scalar_lea.vmem [#allocation14], %s2353_s1  ;;  %s2972_s11 = smov 8  }
  0x6e   : > { %s2973_s12 = smov 12   ;;  %s2975_s30 = smov 20  }
  0x6f   : > { %s2976_s13 = smov 24   ;;  %s2978_s1 = smov [#allocation14]  }
  0x71   : > { %421 = vrot.lane.b32.xlu0 %v3188_v5, %s2962_s9  ;;  %504 = vrot.lane.b32.xlu1 %v398_v1, %s2963_s23  ;;  %s2974_s9 = smov 16  }
  0x75   : > { %502 = vrot.lane.b32.xlu0 %v397_v3, %s2963_s23  ;;  %500 = vrot.lane.b32.xlu1 %v396_v2, %s2963_s23 }
  0x79   : > { %498 = vrot.lane.b32.xlu0 %v395_v4, %s2963_s23 }
  0xdb   : > { %v416_v6 = vpop.permute.xlu0 %415  ;;  %v412_v7 = vpop.permute.xlu1 %411 }
  0xdc   : > { %2453 = vmatpush3.msra.mxu0 %v416_v6 }
  0xdd   : > { %2454 = vmatprep.subr.mxu0 %v2960_v0 }
  0xdf   : > { %v414_v8 = vpop.permute.xlu0 %413  ;;  %v410_v9 = vpop.permute.xlu1 %409 }
  0xe0   : > { %2455 = vmatpush3.msra.mxu0 %v414_v8 }
  0xe1   : > { %2456 = vmatprep.subr.mxu0 %v2960_v0 }
  0xe2   : > { %2457 = vmatpush3.msra.mxu0 %v412_v7 }
  0xe3   : > { %2458 = vmatprep.subr.mxu0 %v2960_v0  ;;  %v505_v11 = vpop.permute.xlu1 %504  ;;  %v422_v13 = vpop.permute.xlu0 %421 }
  0xe4   : > { %2459 = vmatpush3.msra.mxu0 %v410_v9  ;;  %2464 = vmatpush3.msra.mxu1 %v505_v11 }
  0xe5   : > { %2461 = vmatmul.mubr.msk.f32.vlgmr.msra.gmra.mxu0 %vm424_vm1, %v394_v10  ;;  %2474 = vmatprep.subr.mxu0 %v2960_v0 }
  0xe6   : > { %2475 = vmatpush3.msra.mxu0 %v398_v1  ;;  %2482 = vmatprep.mubr.msk.f32.mxu0 %vm2961_vm0, %v2960_v0 }
  0xe7   : > { %2476 = vmatprep.subr.mxu0 %v2960_v0  ;;  %2465 = vmatprep.subr.mxu1 %v2960_v0  ;;  %v503_v14 = vpop.permute.xlu0 %502  ;;  %v501_v15 = vpop.permute.xlu1 %500 }
  0xe8   : > { %2477 = vmatpush3.msra.mxu0 %v397_v3  ;;  %2466 = vmatpush3.msra.mxu1 %v503_v14 }
  0xe9   : > { %2478 = vmatprep.subr.mxu0 %v2960_v0  ;;  %2467 = vmatprep.subr.mxu1 %v2960_v0 }
  0xea   : > { %2479 = vmatpush3.msra.mxu0 %v396_v2  ;;  %2468 = vmatpush3.msra.mxu1 %v501_v15 }
  0xeb   : > { %2480 = vmatprep.subr.mxu0 %v2960_v0  ;;  %v499_v16 = vpop.permute.xlu0 %498  ;;  %2469 = vmatprep.subr.mxu1 %v2960_v0 }
  0xec   : > { %2481 = vmatpush3.msra.mxu0 %v395_v4  ;;  %2470 = vmatpush3.msra.mxu1 %v499_v16 }
  0xed   : > { %2483 = vmatmul.mubr.msk.f32.vlgmr.msra.gmra.mxu0 %vm424_vm1, %v585_v12  ;;  %2505 = vmatprep.subr.mxu0 %v2960_v0 }
  0xee   : > { %2507 = vmatprep.mubr.msk.f32.mxu0 %vm2961_vm0, %v2960_v0  ;;  %2472 = vmatmul.mubr.msk.f32.vlgmr.msra.gmra.mxu1 %vm424_vm1, %v394_v10 }
  0xef   : > { %2485 = vmatprep.subr.mxu1 %v2960_v0  ;;  %2487 = vmatprep.mubr.msk.f32.mxu1 %vm2961_vm0, %v2960_v0 }
 0x1a5   : > { %v494_v17 = vpop.f32.mrf.mxu0 }
 0x1a6   : > { %v495_v18 = vadd.f32 %v494_v17, %v422_v13 }
 0x1a7   : > { %v2462_v19 = vpop.f32.mrf.mxu0 }
 0x1a8   : > { %583 = vst.msk [vmem:[#allocation2] sm:$0xff] %vm424_vm1, %v495_v18 }
 0x1ad   : > { %v667_v20 = vpop.f32.mrf.mxu0 }
 0x1ae   : > { %v668_v21 = vadd.f32 %v3188_v5, %v667_v20  ;;  %v579_v25 = vpop.f32.mrf.mxu1 }
 0x1af   : > { %v2484_v22 = vpop.f32.mrf.mxu0  ;;  %v672_v23 = vld [vmem:[#allocation2] sm:$0xff] }
 0x1b0   : > { %v671_v24 = vmul.f32 0.5, %v668_v21  ;;  %2486 = vmatpush3.xpose.msk.msra.mxu1 %vm674_vm2, %v672_v23  ;;  %v2473_v26 = vpop.f32.mrf.mxu1 }
 0x1b1   : > { %2490 = vmatprep.subr.mxu1 %v2960_v0 }
 0x1b3   : > { %2488 = vmatmul.mubr.msk.f32.vlgmr.msra.gmra.mxu1 %vm674_vm2, %v671_v24 }
 0x1b4   : > { %2492 = vmatprep.mubr.msk.f32.mxu1 %vm2961_vm0, %v2960_v0 }
 0x273   : > { %v747_v27 = vpop.f32.mrf.mxu1 }
 0x274   : > { %v752_v28 = vsel %vm751_vm3, %v747_v27, -inf }
 0x275   : > { %753 = vmax.xlane.f32.xlu1 %v752_v28  ;;  %v2489_v29 = vpop.f32.mrf.mxu1 }
 0x286   : > { %841 = vrot.lane.b32.xlu1 %v672_v23, %s2964_s4 }
 0x28a   : > { %839 = vrot.lane.b32.xlu1 %v671_v24, %s2964_s4 }
 0x28e   : > { %1014 = vrot.lane.b32.xlu1 %v671_v24, %s2965_s17 }
 0x292   : > { %1188 = vrot.lane.b32.xlu1 %v671_v24, %s2966_s18 }
 0x296   : > { %1362 = vrot.lane.b32.xlu1 %v671_v24, %s2967_s15 }
 0x29a   : > { %1536 = vrot.lane.b32.xlu1 %v671_v24, %s2968_s0 }
 0x29e   : > { %1710 = vrot.lane.b32.xlu1 %v671_v24, %s2969_s20 }
 0x2a2   : > { %1884 = vrot.lane.b32.xlu1 %v671_v24, %s2970_s21 }
 0x2fe   : > { %v754_v30 = vpop.xlane.xlu1 %753 }
 0x2ff   : > { %v755_v31 = vsub.f32 %v747_v27, %v754_v30 }
 0x301   : > { %v756_v32 = vmul.f32 1.442695, %v755_v31 }
 0x302   : > { %v842_v35 = vpop.permute.xlu1 %841 }
 0x303   : > { %2690 = vpow2.f32 %v756_v32 }
 0x306   : > { %v840_v36 = vpop.permute.xlu1 %839 }
 0x30a   : > { %v1015_v38 = vpop.permute.xlu1 %1014 }
 0x30e   : > { %v1189_v41 = vpop.permute.xlu1 %1188 }
 0x310   : > { %v2691_v33 = vpop.eup %2690 }
 0x311   : > { %v758_v34 = vsel %vm751_vm3, %v2691_v33, 0.0 }
 0x312   : > { %759 = vadd.xlane.f32.xlu0 %v758_v34  ;;  %v1363_v44 = vpop.permute.xlu1 %1362 }
 0x316   : > { %v1537_v49 = vpop.permute.xlu1 %1536 }
 0x31a   : > { %v1711_v52 = vpop.permute.xlu1 %1710 }
 0x31e   : > { %v1885_v54 = vpop.permute.xlu1 %1884 }
 0x328   : > { %510 = vrot.lane.b32.xlu0 %v3188_v5, %s2963_s23  ;;  %s2977_s23 = smov 28  }
 0x32c   : > { %1016 = vrot.lane.b32.xlu0 %v672_v23, %s2965_s17 }
 0x330   : > { %1190 = vrot.lane.b32.xlu0 %v672_v23, %s2966_s18 }
 0x334   : > { %1364 = vrot.lane.b32.xlu0 %v672_v23, %s2967_s15 }
 0x338   : > { %1538 = vrot.lane.b32.xlu0 %v672_v23, %s2968_s0 }
 0x33c   : > { %1712 = vrot.lane.b32.xlu0 %v672_v23, %s2969_s20 }
 0x340   : > { %1886 = vrot.lane.b32.xlu0 %v672_v23, %s2970_s21 }
 0x39b   : > { %v760_v37 = vpop.xlane.xlu0 %759 }
 0x39c   : > { %2692 = vrcp.f32 %v760_v37 }
 0x39f   : > { %v511_v39 = vpop.permute.xlu0 %510 }
 0x3a0   : > { %v580_v40 = vadd.f32 %v579_v25, %v511_v39 }
 0x3a2   : > { %584 = vst.msk [vmem:[#allocation3] sm:$0xff] %vm424_vm1, %v580_v40 }
 0x3a3   : > { %v1017_v42 = vpop.permute.xlu0 %1016 }
 0x3a4   : > { %2506 = vmatpush3.xpose.msk.msra.mxu0 %vm674_vm2, %v1017_v42 }
 0x3a5   : > { %2515 = vmatprep.subr.mxu0 %v2960_v0 }
 0x3a7   : > { %v1191_v43 = vpop.permute.xlu0 %1190  ;;  %2508 = vmatmul.mubr.msk.f32.vlgmr.msra.gmra.mxu0 %vm674_vm2, %v1015_v38 }
 0x3a8   : > { %2516 = vmatpush3.xpose.msk.msra.mxu0 %vm674_vm2, %v1191_v43  ;;  %2517 = vmatprep.mubr.msk.f32.mxu0 %vm2961_vm0, %v2960_v0 }
 0x3a9   : > { %v2693_v45 = vpop.eup %2692  ;;  %v3253_v46 = vld [vmem:[#allocation3] sm:$0xff]  ;;  %2525 = vmatprep.subr.mxu0 %v2960_v0 }
 0x3aa   : > { %2491 = vmatpush3.msra.mxu1 %v3253_v46  ;;  %v763_v47 = vmul.f32 %v2693_v45, %v2691_v33 }
 0x3ab   : > { %2495 = vmatprep.subr.mxu1 %v2960_v0  ;;  %v1365_v48 = vpop.permute.xlu0 %1364  ;;  %2518 = vmatmul.mubr.msk.f32.vlgmr.msra.gmra.mxu0 %vm674_vm2, %v1189_v41 }
 0x3ac   : > { %764 = vst.msk [vmem:[%s3259_s8] sm:$0xff] %vm751_vm3, %v763_v47  ;;  %2493 = vmatmul.mubr.msk.f32.vlgmr.msra.gmra.mxu1 %vm751_vm3, %v763_v47  ;;  %2526 = vmatpush3.xpose.msk.msra.mxu0 %vm674_vm2, %v1365_v48 }
 0x3ad   : > { %2496 = vmatpush3.xpose.msk.msra.mxu1 %vm674_vm2, %v842_v35  ;;  %2527 = vmatprep.mubr.msk.f32.mxu0 %vm2961_vm0, %v2960_v0 }
 0x3ae   : > { %2497 = vmatprep.mubr.msk.f32.mxu1 %vm2961_vm0, %v2960_v0  ;;  %2535 = vmatprep.subr.mxu0 %v2960_v0 }
 0x3af   : > { %v1539_v50 = vpop.permute.xlu0 %1538  ;;  %2528 = vmatmul.mubr.msk.f32.vlgmr.msra.gmra.mxu0 %vm674_vm2, %v1363_v44  ;;  %2500 = vmatprep.subr.mxu1 %v2960_v0 }
 0x3b0   : > { %2498 = vmatmul.mubr.msk.f32.vlgmr.msra.gmra.mxu1 %vm674_vm2, %v840_v36  ;;  %2536 = vmatpush3.xpose.msk.msra.mxu0 %vm674_vm2, %v1539_v50 }
 0x3b1   : > { %2537 = vmatprep.mubr.msk.f32.mxu0 %vm2961_vm0, %v2960_v0  ;;  %2545 = vmatprep.subr.mxu0 %v2960_v0 }
 0x3b2   : > { %2502 = vmatprep.mubr.msk.f32.mxu1 %vm2961_vm0, %v2960_v0 }
 0x3b3   : > { %v1713_v51 = vpop.permute.xlu0 %1712  ;;  %2538 = vmatmul.mubr.msk.f32.vlgmr.msra.gmra.mxu0 %vm674_vm2, %v1537_v49 }
 0x3b4   : > { %2546 = vmatpush3.xpose.msk.msra.mxu0 %vm674_vm2, %v1713_v51  ;;  %2547 = vmatprep.mubr.msk.f32.mxu0 %vm2961_vm0, %v2960_v0 }
 0x3b5   : > { %2555 = vmatprep.subr.mxu0 %v2960_v0 }
 0x3b7   : > { %v1887_v53 = vpop.permute.xlu0 %1886  ;;  %2548 = vmatmul.mubr.msk.f32.vlgmr.msra.gmra.mxu0 %vm674_vm2, %v1711_v52 }
 0x3b8   : > { %2556 = vmatpush3.xpose.msk.msra.mxu0 %vm674_vm2, %v1887_v53  ;;  %2557 = vmatprep.mubr.msk.f32.mxu0 %vm2961_vm0, %v2960_v0 }
 0x3b9   : > { %2565 = vmatprep.subr.mxu0 %v2960_v0 }
 0x3bb   : > { %2558 = vmatmul.mubr.msk.f32.vlgmr.msra.gmra.mxu0 %vm674_vm2, %v1885_v54 }
 0x3bc   : > { %2573 = vmatprep.mubr.msk.f32.mxu0 %vm2961_vm0, %v2960_v0 }
 0x467   : > { %v1088_v55 = vpop.f32.mrf.mxu0 }
 0x468   : > { %v1092_v56 = vsel %vm751_vm3, %v1088_v55, -inf }
 0x469   : > { %1093 = vmax.xlane.f32.xlu1 %v1092_v56  ;;  %v2509_v57 = vpop.f32.mrf.mxu0 }
 0x46b   : > { %v1262_v58 = vpop.f32.mrf.mxu0 }
 0x46c   : > { %v834_v59 = vpop.f32.mrf.mxu1  ;;  %v1266_v7 = vsel %vm751_vm3, %v1262_v58, -inf }
 0x46d   : > { %838 = vst.msk [vmem:[#allocation4] sm:$0xff] %vm674_vm2, %v834_v59  ;;  %v2519_v60 = vpop.f32.mrf.mxu0 }
 0x46e   : > { %v2494_v61 = vpop.f32.mrf.mxu1 }
 0x46f   : > { %v1436_v62 = vpop.f32.mrf.mxu0 }
 0x470   : > { %v913_v63 = vpop.f32.mrf.mxu1  ;;  %v1440_v10 = vsel %vm751_vm3, %v1436_v62, -inf }
 0x471   : > { %v2529_v1 = vpop.f32.mrf.mxu0  ;;  %v917_v2 = vsel %vm751_vm3, %v913_v63, -inf }
 0x472   : > { %918 = vmax.xlane.f32.xlu0 %v917_v2  ;;  %v2499_v3 = vpop.f32.mrf.mxu1 }
 0x473   : > { %v1610_v4 = vpop.f32.mrf.mxu0 }
 0x474   : > { %v1614_v5 = vsel %vm751_vm3, %v1610_v4, -inf }
 0x475   : > { %1615 = vmax.xlane.f32.xlu1 %v1614_v5  ;;  %v2539_v6 = vpop.f32.mrf.mxu0 }
 0x476   : > { %1267 = vmax.xlane.f32.xlu0 %v1266_v7 }
 0x477   : > { %v1784_v8 = vpop.f32.mrf.mxu0 }
 0x478   : > { %v1788_v14 = vsel %vm751_vm3, %v1784_v8, -inf }
 0x479   : > { %v2549_v9 = vpop.f32.mrf.mxu0 }
 0x47a   : > { %1441 = vmax.xlane.f32.xlu0 %v1440_v10 }
 0x47b   : > { %v1958_v11 = vpop.f32.mrf.mxu0 }
 0x47c   : > { %v1962_v12 = vsel %vm751_vm3, %v1958_v11, -inf }
 0x47d   : > { %1963 = vmax.xlane.f32.xlu1 %v1962_v12  ;;  %v2559_v13 = vpop.f32.mrf.mxu0 }
 0x47e   : > { %1789 = vmax.xlane.f32.xlu0 %v1788_v14 }
 0x4f2   : > { %v1094_v15 = vpop.xlane.xlu1 %1093 }
 0x4f3   : > { %v1095_v16 = vsub.f32 %v1088_v55, %v1094_v15 }
 0x4f5   : > { %v1096_v17 = vmul.f32 1.442695, %v1095_v16 }
 0x4f7   : > { %2694 = vpow2.f32 %v1096_v17 }
 0x4fb   : > { %v919_v18 = vpop.xlane.xlu0 %918 }
 0x4fc   : > { %v920_v29 = vsub.f32 %v913_v63, %v919_v18 }
 0x4fe   : > { %v1616_v19 = vpop.xlane.xlu1 %1615  ;;  %v921_v36 = vmul.f32 1.442695, %v920_v29 }
 0x4ff   : > { %v1617_v20 = vsub.f32 %v1610_v4, %v1616_v19  ;;  %v1268_v21 = vpop.xlane.xlu0 %1267 }
 0x500   : > { %v1269_v22 = vsub.f32 %v1262_v58, %v1268_v21 }
 0x501   : > { %v1618_v23 = vmul.f32 1.442695, %v1617_v20 }
 0x502   : > { %v1270_v24 = vmul.f32 1.442695, %v1269_v22  ;;  %v2062_v22 = vld [vmem:[#allocation11 + $0x18] sm:$0xff] }
 0x503   : > { %v1442_v25 = vpop.xlane.xlu0 %1441  ;;  %2566 = vmatpush3.msra.mxu0 %v2062_v22 }
 0x504   : > { %v2695_v26 = vpop.eup %2694  ;;  %2696 = vpow2.f32 %v1270_v24  ;;  %v1443_v27 = vsub.f32 %v1436_v62, %v1442_v25  ;;  %2567 = vmatprep.subr.mxu0 %v2960_v0  ;;  %v2060_v25 = vld [vmem:[#allocation11 + $0x8] sm:$0xff] }
 0x505   : > { %v1098_v28 = vsel %vm751_vm3, %v2695_v26, 0.0  ;;  %2698 = vpow2.f32 %v1618_v23  ;;  %v2061_v23 = vld [vmem:[#allocation11 + $0x10] sm:$0xff] }
 0x506   : > { %v1444_v30 = vmul.f32 1.442695, %v1443_v27  ;;  %1099 = vadd.xlane.f32.xlu1 %v1098_v28  ;;  %v1964_v31 = vpop.xlane.xlu1 %1963  ;;  %2568 = vmatpush3.msra.mxu0 %v2061_v23  ;;  %v2059_v27 = vld [vmem:[#allocation11] sm:$0xff] }
 0x507   : > { %v1965_v32 = vsub.f32 %v1958_v11, %v1964_v31  ;;  %v1790_v33 = vpop.xlane.xlu0 %1789  ;;  %2569 = vmatprep.subr.mxu0 %v2960_v0 }
 0x508   : > { %2700 = vpow2.f32 %v1444_v30  ;;  %v1791_v34 = vsub.f32 %v1784_v8, %v1790_v33  ;;  %2570 = vmatpush3.msra.mxu0 %v2060_v25 }
 0x509   : > { %v1966_v35 = vmul.f32 1.442695, %v1965_v32  ;;  %2571 = vmatprep.subr.mxu0 %v2960_v0 }
 0x50a   : > { %v1792_v37 = vmul.f32 1.442695, %v1791_v34  ;;  %2572 = vmatpush3.msra.mxu0 %v2059_v27 }
 0x50b   : > { %2702 = vpow2.f32 %v1966_v35 }
 0x50c   : > { %2704 = vpow2.f32 %v1792_v37 }
 0x50d   : > { %2706 = vpow2.f32 %v921_v36 }
 0x511   : > { %v2697_v38 = vpop.eup %2696 }
 0x512   : > { %v1272_v39 = vsel %vm751_vm3, %v2697_v38, 0.0  ;;  %v2699_v40 = vpop.eup %2698 }
 0x513   : > { %1273 = vadd.xlane.f32.xlu0 %v1272_v39  ;;  %v1620_v42 = vsel %vm751_vm3, %v2699_v40, 0.0 }
 0x515   : > { %v2701_v41 = vpop.eup %2700 }
 0x516   : > { %v1446_v43 = vsel %vm751_vm3, %v2701_v41, 0.0 }
 0x517   : > { %1621 = vadd.xlane.f32.xlu0 %v1620_v42  ;;  %1447 = vadd.xlane.f32.xlu1 %v1446_v43 }
 0x518   : > { %v2703_v44 = vpop.eup %2702 }
 0x519   : > { %v2705_v45 = vpop.eup %2704  ;;  %v1968_v47 = vsel %vm751_vm3, %v2703_v44, 0.0 }
 0x51a   : > { %v1794_v48 = vsel %vm751_vm3, %v2705_v45, 0.0  ;;  %v2707_v49 = vpop.eup %2706 }
 0x51b   : > { %1795 = vadd.xlane.f32.xlu1 %v1794_v48  ;;  %1969 = vadd.xlane.f32.xlu0 %v1968_v47  ;;  %v923_v50 = vsel %vm751_vm3, %v2707_v49, 0.0 }
 0x51f   : > { %924 = vadd.xlane.f32.xlu0 %v923_v50 }
 0x52c   : > { %932 = vrot.lane.b32.xlu1 %v3253_v46, %s2964_s4  ;;  %s2399_s4 = sshll.u32 %s2944_s27, 10 }
 0x530   : > { %1280 = vrot.lane.b32.xlu1 %v3253_v46, %s2966_s18 }
 0x534   : > { %1454 = vrot.lane.b32.xlu1 %v3253_v46, %s2967_s15 }
 0x535   : > { %1106 = vrot.lane.b32.xlu0 %v3253_v46, %s2965_s17  ;;  %s2178_s17 = sshll.u32 %s3259_s8, 4  ;;  %s3373_s17 = int_to_ptr.vmem [resolvable:$true] %s2178_s17 }
 0x538   : > { %1802 = vrot.lane.b32.xlu1 %v3253_v46, %s2969_s20  ;;  %s2150_s20 = scalar_lea.sflag [#allocation15], %s3154_s16 }
 0x539   : > { %1628 = vrot.lane.b32.xlu0 %v3253_v46, %s2968_s0  ;;  %s3371_s0 = scalar_lea.hbm %s3457_s7, %s2399_s4 }
 0x53d   : > { %1976 = vrot.lane.b32.xlu0 %v3253_v46, %s2970_s21  ;;  %s2830_s21 = scalar_lea.vmem %s3373_s17, 1024 }
 0x53e   : > { %p2831_p4 = scmp.ne.s32.totalorder %s3373_s17, %s2830_s21 }
 0x540   : > { %p2832_p3 = pnand %p2831_p4, %p3112_p9 }
 0x542   : > { %p2833_p7 = pneg %p2832_p3 }
 0x58f   : > { %v1100_v51 = vpop.xlane.xlu1 %1099 }
 0x590   : > { %2708 = vrcp.f32 %v1100_v51 }
 0x59c   : > { %v1274_v52 = vpop.xlane.xlu0 %1273 }
 0x59d   : > { %v2709_v53 = vpop.eup %2708  ;;  %2710 = vrcp.f32 %v1274_v52 }
 0x59e   : > { %v1103_v54 = vmul.f32 %v2709_v53, %v2695_v26 }
 0x5a0   : > { %v1622_v55 = vpop.xlane.xlu0 %1621  ;;  %v1448_v56 = vpop.xlane.xlu1 %1447  ;;  %2368 = vst.msk [vmem:[%s3259_s8 + $0x10] sm:$0xff] %vm751_vm3, %v1103_v54 }
 0x5a1   : > { %2712 = vrcp.f32 %v1622_v55 }
 0x5a2   : > { %2714 = vrcp.f32 %v1448_v56 }
 0x5a4   : > { %v1970_v57 = vpop.xlane.xlu0 %1969  ;;  %v1796_v58 = vpop.xlane.xlu1 %1795 }
 0x5a5   : > { %2716 = vrcp.f32 %v1970_v57 }
 0x5a6   : > { %2718 = vrcp.f32 %v1796_v58 }
 0x5a8   : > { %v925_v46 = vpop.xlane.xlu0 %924  ;;  %v933_v59 = vpop.permute.xlu1 %932 }
 0x5a9   : > { %2720 = vrcp.f32 %v925_v46  ;;  %2501 = vmatpush3.msra.mxu1 %v933_v59 }
 0x5aa   : > { %v2711_v60 = vpop.eup %2710  ;;  %2510 = vmatprep.subr.mxu1 %v2960_v0 }
 0x5ab   : > { %v1277_v61 = vmul.f32 %v2711_v60, %v2697_v38 }
 0x5ac   : > { %v1107_v9 = vpop.permute.xlu0 %1106  ;;  %v1281_v10 = vpop.permute.xlu1 %1280 }
 0x5ad   : > { %2372 = vst.msk [vmem:[%s3259_s8 + $0x18] sm:$0xff] %vm751_vm3, %v1277_v61 }
 0x5ae   : > { %v2713_v62 = vpop.eup %2712 }
 0x5af   : > { %v2715_v63 = vpop.eup %2714  ;;  %v1625_v1 = vmul.f32 %v2713_v62, %v2699_v40 }
 0x5b0   : > { %v1451_v2 = vmul.f32 %v2715_v63, %v2701_v41  ;;  %v1455_v11 = vpop.permute.xlu1 %1454  ;;  %v1629_v12 = vpop.permute.xlu0 %1628 }
 0x5b1   : > { %2380 = vst.msk [vmem:[%s3259_s8 + $0x28] sm:$0xff] %vm751_vm3, %v1625_v1 }
 0x5b2   : > { %v2717_v3 = vpop.eup %2716  ;;  %2376 = vst.msk [vmem:[%s3259_s8 + $0x20] sm:$0xff] %vm751_vm3, %v1451_v2 }
 0x5b3   : > { %v2719_v4 = vpop.eup %2718  ;;  %v1973_v5 = vmul.f32 %v2717_v3, %v2703_v44 }
 0x5b4   : > { %v1799_v6 = vmul.f32 %v2719_v4, %v2705_v45  ;;  %v1803_v13 = vpop.permute.xlu1 %1802  ;;  %v1977_v14 = vpop.permute.xlu0 %1976 }
 0x5b5   : > { %2388 = vst.msk [vmem:[%s3259_s8 + $0x38] sm:$0xff] %vm751_vm3, %v1973_v5 }
 0x5b6   : > { %v2721_v7 = vpop.eup %2720  ;;  %2384 = vst.msk [vmem:[%s3259_s8 + $0x30] sm:$0xff] %vm751_vm3, %v1799_v6 }
 0x5b7   : > { %v928_v8 = vmul.f32 %v2721_v7, %v2707_v49 }
 0x5b9   : > { %2364 = vst.msk [vmem:[%s3259_s8 + $0x8] sm:$0xff] %vm751_vm3, %v928_v8  ;;  %2503 = vmatmul.mubr.msk.f32.vlgmr.msra.gmra.mxu1 %vm751_vm3, %v928_v8 }
 0x5ba   : > { %2511 = vmatpush3.msra.mxu1 %v1107_v9  ;;  %2512 = vmatprep.mubr.msk.f32.mxu1 %vm2961_vm0, %v2960_v0 }
 0x5bb   : > { %2520 = vmatprep.subr.mxu1 %v2960_v0 }
 0x5bd   : > { %2513 = vmatmul.mubr.msk.f32.vlgmr.msra.gmra.mxu1 %vm751_vm3, %v1103_v54 }
 0x5be   : > { %2521 = vmatpush3.msra.mxu1 %v1281_v10  ;;  %2522 = vmatprep.mubr.msk.f32.mxu1 %vm2961_vm0, %v2960_v0 }
 0x5bf   : > { %2530 = vmatprep.subr.mxu1 %v2960_v0 }
 0x5c1   : > { %2523 = vmatmul.mubr.msk.f32.vlgmr.msra.gmra.mxu1 %vm751_vm3, %v1277_v61 }
 0x5c2   : > { %2531 = vmatpush3.msra.mxu1 %v1455_v11  ;;  %2532 = vmatprep.mubr.msk.f32.mxu1 %vm2961_vm0, %v2960_v0 }
 0x5c3   : > { %2540 = vmatprep.subr.mxu1 %v2960_v0 }
 0x5c5   : > { %2533 = vmatmul.mubr.msk.f32.vlgmr.msra.gmra.mxu1 %vm751_vm3, %v1451_v2 }
 0x5c6   : > { %2541 = vmatpush3.msra.mxu1 %v1629_v12  ;;  %2542 = vmatprep.mubr.msk.f32.mxu1 %vm2961_vm0, %v2960_v0 }
 0x5c7   : > { %2550 = vmatprep.subr.mxu1 %v2960_v0 }
 0x5c9   : > { %2543 = vmatmul.mubr.msk.f32.vlgmr.msra.gmra.mxu1 %vm751_vm3, %v1625_v1 }
 0x5ca   : > { %2551 = vmatpush3.msra.mxu1 %v1803_v13  ;;  %2552 = vmatprep.mubr.msk.f32.mxu1 %vm2961_vm0, %v2960_v0 }
 0x5cb   : > { %2560 = vmatprep.subr.mxu1 %v2960_v0 }
 0x5cd   : > { %2553 = vmatmul.mubr.msk.f32.vlgmr.msra.gmra.mxu1 %vm751_vm3, %v1799_v6 }
 0x5ce   : > { %2561 = vmatpush3.msra.mxu1 %v1977_v14  ;;  %2562 = vmatprep.mubr.msk.f32.mxu1 %vm2961_vm0, %v2960_v0 }
 0x5d1   : > { %2563 = vmatmul.mubr.msk.f32.vlgmr.msra.gmra.mxu1 %vm751_vm3, %v1973_v5 }
 0x679   : > { %v1004_v15 = vpop.f32.mrf.mxu1 }
 0x67a   : > { %1009 = vrot.lane.b32.xlu1 %v1004_v15, %s2971_s2  ;;  %s2834_s2 = sshll.u32 %s2978_s1, 4  ;;  %s2835_s2 = int_to_ptr.vmem [resolvable:$false] %s2834_s2 }
 0x67b   : > { %v2504_v16 = vpop.f32.mrf.mxu1  ;;  %s2836_s8 = scalar_lea.vmem %s2835_s2, 2048  ;;  %p2837_p13 = scmp.lt.s32.totalorder %s3373_s17, %s2835_s2 }
 0x67c   : > { %p2838_p5 = scmp.lt.s32.totalorder %s2836_s8, %s2830_s21 }
 0x67d   : > { %v1178_v17 = vpop.f32.mrf.mxu1 }
 0x67e   : > { %1183 = vrot.lane.b32.xlu0 %v1178_v17, %s2972_s11  ;;  %p2839_p10 = por %p2838_p5, %p2837_p13 }
 0x67f   : > { %v2514_v18 = vpop.f32.mrf.mxu1 }
 0x680   : > { %p2840_p1 = pnand %p2839_p10, %p2833_p7 }
 0x681   : > { %v1352_v19 = vpop.f32.mrf.mxu1 }
 0x682   : > { %1357 = vrot.lane.b32.xlu1 %v1352_v19, %s2973_s12 }
 0x683   : > { %v2524_v20 = vpop.f32.mrf.mxu1 }
 0x685   : > { %v1526_v21 = vpop.f32.mrf.mxu1 }
 0x686   : > { %1531 = vrot.lane.b32.xlu0 %v1526_v21, %s2974_s9 }
 0x687   : > { %v2534_v24 = vpop.f32.mrf.mxu1 }
 0x689   : > { %v1700_v26 = vpop.f32.mrf.mxu1 }
 0x68a   : > { %1705 = vrot.lane.b32.xlu1 %v1700_v26, %s2975_s30 }
 0x68b   : > { %v2544_v28 = vpop.f32.mrf.mxu1 }
 0x68d   : > { %v1874_v29 = vpop.f32.mrf.mxu1 }
 0x68e   : > { %1879 = vrot.lane.b32.xlu0 %v1874_v29, %s2976_s13 }
 0x68f   : > { %v2554_v30 = vpop.f32.mrf.mxu1 }
 0x691   : > { %v2048_v31 = vpop.f32.mrf.mxu1 }
 0x692   : > { %2053 = vrot.lane.b32.xlu1 %v2048_v31, %s2977_s23 }
 0x693   : > { %v2564_v32 = vpop.f32.mrf.mxu1 }
 0x6ec   : > { %v1010_v33 = vpop.permute.xlu1 %1009 }
 0x6ed   : > { %1013 = vst.msk [vmem:[#allocation4] sm:$0xff] %vm1012_vm4, %v1010_v33 }
 0x6f0   : > { %v1184_v34 = vpop.permute.xlu0 %1183 }
 0x6f1   : > { %1187 = vst.msk [vmem:[#allocation4] sm:$0xff] %vm1186_vm5, %v1184_v34 }
 0x6f4   : > { %v1358_v35 = vpop.permute.xlu1 %1357 }
 0x6f5   : > { %1361 = vst.msk [vmem:[#allocation4] sm:$0xff] %vm1360_vm6, %v1358_v35 }
 0x6f8   : > { %v1532_v0 = vpop.permute.xlu0 %1531 }
 0x6f9   : > { %1535 = vst.msk [vmem:[#allocation4] sm:$0xff] %vm1534_vm7, %v1532_v0 }
 0x6fc   : > { %v1706_v36 = vpop.permute.xlu1 %1705 }
 0x6fd   : > { %1709 = vst.msk [vmem:[#allocation4] sm:$0xff] %vm1708_vm8, %v1706_v36 }
 0x700   : > { %v1880_v37 = vpop.permute.xlu0 %1879 }
 0x701   : > { %1883 = vst.msk [vmem:[#allocation4] sm:$0xff] %vm1882_vm9, %v1880_v37 }
 0x704   : > { %v2054_v38 = vpop.permute.xlu1 %2053 }
 0x705   : > { %2057 = vst.msk [vmem:[#allocation4] sm:$0xff] %vm2056_vm10, %v2054_v38 }
 0x70c   : > { %v2058_v39 = vld [vmem:[#allocation4] sm:$0xff] }
 0x70d   : > { %2574 = vmatmul.mubr.msk.f32.vlgmr.msra.gmra.mxu0 %vm424_vm1, %v2058_v39 }
 0x70e   : > { %2843 = shalt.err (!%p2840_p1)
}
 0x70f   : > { %s2844_s12 = scalar_lea.hbm %s3371_s0, 1024  ;;  %s2848_s13 = scalar_lea.hbm %s3457_s7, 2048 }
 0x710   : > { %p2845_p2 = scmp.ne.s32.totalorder %s3371_s0, %s2844_s12  ;;  %p2849_p11 = scmp.lt.s32.totalorder %s3371_s0, %s3457_s7 }
 0x711   : > { %p2850_p0 = scmp.lt.s32.totalorder %s2848_s13, %s2844_s12 }
 0x712   : > { %p2846_p6 = pnand %p2845_p2, %p3112_p9 }
 0x713   : > { %p2851_p12 = por %p2850_p0, %p2849_p11 }
 0x714   : > { %p2847_p8 = pneg %p2846_p6 }
 0x716   : > { %p2852_p4 = pnand %p2851_p12, %p2847_p8 }
 0x718   : > { %2855 = shalt.err (!%p2852_p4)
}
 0x719   : > { %s2979_s18 = smov 128   ;;  %v2390_v40 = vld [vmem:[%s3455_s5] ss:$0 sm:$0xff]  ;;  %s2394_s1 = sshll.u32 %s2944_s27, 7 }
 0x71a   : > { %2589 = dma.vmem_to_hbm [thread:$0]  (%p3112_p9), %s3373_s17, 1024, %s3371_s0, %s2150_s20, %s2979_s18, %s2979_s18, %s2972_s11  }
 0x71b   : > { %s382_s2 = scalar_lea.vmem [#allocation13], %s3157_s22  ;;  %s3407_s30 = scalar_lea.hbm %s3456_s6, %s2394_s1 }
 0x71c   : > { %s2164_s8 = sshll.u32 %s382_s2, 4  ;;  %s2145_s13 = scalar_lea.sflag [#allocation7], %s3154_s16  ;;  %s2165_s8 = int_to_ptr.vmem [resolvable:$true] %s2164_s8 }
 0x71d   : > { %s2856_s11 = scalar_lea.vmem %s2165_s8, 128  ;;  %s2980_s27 = smov [#allocation13]  }
 0x71e   : > { %p2857_p3 = scmp.ne.s32.totalorder %s2165_s8, %s2856_s11  ;;  %s2860_s22 = sshll.u32 %s2980_s27, 4  ;;  %s2861_s22 = int_to_ptr.vmem [resolvable:$false] %s2860_s22 }
 0x71f   : > { %s2862_s17 = scalar_lea.vmem %s2861_s22, 256  ;;  %p2863_p5 = scmp.lt.s32.totalorder %s2165_s8, %s2861_s22 }
 0x720   : > { %p2858_p7 = pnand %p2857_p3, %p3112_p9  ;;  %p2864_p10 = scmp.lt.s32.totalorder %s2862_s17, %s2856_s11 }
 0x722   : > { %p2859_p13 = pneg %p2858_p7  ;;  %p2865_p1 = por %p2864_p10, %p2863_p5 }
 0x724   : > { %p2866_p2 = pnand %p2865_p1, %p2859_p13 }
 0x7cd   : > { %v2139_v41 = vpop.f32.mrf.mxu0 }
 0x7ce   : > { %v2140_v42 = vadd.f32 %v2390_v40, %v2139_v41 }
 0x7cf   : > { %v2575_v43 = vpop.f32.mrf.mxu0 }
 0x7d0   : > { %2143 = vst.msk [vmem:[%s382_s2] sm:$0xff] %vm424_vm1, %v2140_v42 }
 0x7d1   : > { %2869 = shalt.err (!%p2866_p2)
}
 0x7d2   : > { %s2870_s0 = scalar_lea.hbm %s3407_s30, 128  ;;  %s2874_s23 = scalar_lea.hbm %s3456_s6, 256 }
 0x7d3   : > { %p2871_p6 = scmp.ne.s32.totalorder %s3407_s30, %s2870_s0  ;;  %p2875_p0 = scmp.lt.s32.totalorder %s3407_s30, %s3456_s6 }
 0x7d4   : > { %p2876_p12 = scmp.lt.s32.totalorder %s2874_s23, %s2870_s0 }
 0x7d5   : > { %p2872_p8 = pnand %p2871_p6, %p3112_p9 }
 0x7d6   : > { %p2877_p4 = por %p2876_p12, %p2875_p0 }
 0x7d7   : > { %p2873_p11 = pneg %p2872_p8 }
 0x7d9   : > { %p2878_p3 = pnand %p2877_p4, %p2873_p11 }
 0x7db   : > { %2881 = shalt.err (!%p2878_p3)
}
 0x7dc   : > { %2588 = dma.vmem_to_hbm [thread:$0]  (%p3112_p9), %s2165_s8, 128, %s3407_s30, %s2145_s13  }
 0x7dd PF: > { %s2193_s15 = sand.u32 1, %s2932_s24   ;;  %p3480_p7 = scmp.ne.s32.totalorder %s3465_s10, 0 }
 0x7de   : > { %p3481_p13 = scmp.ge.s32.totalorder %s2952_s29, 2  ;;  %s2194_s21 = scalar_lea.sflag [#allocation7], %s2193_s15 }
 0x7e0   : > { %p2607_p5 = pnand %p3481_p13, %p3480_p7 }
 0x7e2   : > { %p2608_p10 = pneg %p2607_p5 }
 0x7e4   : > { %2923 = dma.done.wait (%p2608_p10), %s2194_s21, 128  }
 0x7e5   : > { %2925 = vsyncadd (%p2608_p10), %s2194_s21, 4294967168  ;;  %s2203_s1 = scalar_lea.sflag [#allocation15], %s2193_s15 }
 0x7e6   : > { %2927 = dma.done.wait (%p2608_p10), %s2203_s1, 1024  }
 0x7e7   : > { %2929 = vsyncadd (%p2608_p10), %s2203_s1, 4294966272  ;;  %s31_s29 = sadd.s32 1, %s2952_s29   ;;  %s3482_s14 = sld [smem:[#allocation22_spill]] }
 0x7e8   : > { %p28_p1 = scmp.ge.s32.totalorder %s31_s29, 4   ;;  %s3483_s24 = smov %s2936_s25 }
 0x7e9   : > { %s3484_s25 = smov %s2940_s26  ;;  %s3485_s26 = smov %s3121_s19 }
 0x7ea   : > { %s3486_s27 = smov %s2948_s28  ;;  %30 = sbr.rel (!%p28_p1) target bundleno = 16 (0x10), region = 138 }
 0x7ed   : > { %s3487_s28 = smov %s3482_s14 }
 0x7ef   :  { %2208 = vsyncpa [#allocation6], 1 }
 0x7f0   :  { %2210 = vsyncpa [#allocation6 + $0x1], 1 }
 0x7f1   :  { %2211 = vsyncpa [#allocation9], 1 }
 0x7f2   :  { %2213 = vsyncpa [#allocation9 + $0x1], 1 }
 0x7f3   :  { %2214 = vsyncpa [#allocation12], 1 }
 0x7f4   :  { %2215 = vsyncpa [#allocation7], 1 }
 0x7f5   :  { %2217 = vsyncpa [#allocation7 + $0x1], 1 }
 0x7f6   :  { %2218 = vsyncpa [#allocation15], 1 }
 0x7f7   :  { %2220 = vsyncpa [#allocation15 + $0x1], 1 }

</bundles_post_ra>
